<compile_context>
chip_gen: v6e
topology: v6e:2x2x1
jax: 0.10.0
libtpu: 0.0.40
codegen_flags: <defaults>
</compile_context>

<pallas_src>
import numpy as np
import jax
import jax.numpy as jnp
from jax import lax
from jax.experimental import pallas as pl
from jax.experimental.pallas import tpu as pltpu

_SQRT_HALF = 0.7071067811865476
_LN_EPS = 1e-5


def _gelu(x):
    # exact (erf-based) GELU, matching torch.nn.GELU() default
    return 0.5 * x * (1.0 + lax.erf(x * _SQRT_HALF))


# ---------------------------------------------------------------------------
# fused kernel: [LayerNorm -> MLP] -> project(+w1d) -> Fold -> concatFuse
# one grid step == one batch element
# ---------------------------------------------------------------------------
def _make_kernel(apply_mlp, KK, L, td):
    def kernel(*refs):
        if apply_mlp:
            (dec_ref, enc_ref, wm1g, bm1g, wm2, bm2,
             wpw_all, f_stack, w1e, bias1, w2, b2, o_ref, y_stack) = refs
            x = dec_ref[...].astype(jnp.float32)                    # [L, dim]
            # LayerNorm statistics in f32 (biased variance == torch);
            # gamma/beta were folded into wm1g / bm1g offline.
            mu = jnp.mean(x, axis=-1, keepdims=True)
            var = jnp.mean((x - mu) * (x - mu), axis=-1, keepdims=True)
            xn = (x - mu) * lax.rsqrt(var + _LN_EPS)
            h = _gelu(jnp.dot(xn.astype(jnp.bfloat16), wm1g[...],
                              preferred_element_type=jnp.float32) + bm1g[...])
            t = jnp.dot(h.astype(jnp.bfloat16), wm2[...],
                        preferred_element_type=jnp.float32) + bm2[...]
            tb = t.astype(jnp.bfloat16)                             # [L, td]
        else:
            (dec_ref, enc_ref,
             wpw_all, f_stack, w1e, bias1, w2, b2, o_ref, y_stack) = refs
            tb = dec_ref[...]                                       # [L, td] bf16

        # --- project, merged over all KK kernel positions and with the
        #     concatFuse dec-half weight (w1d) pre-folded in: ONE MXU op with
        #     N = KK*td instead of KK tiny N=td matmuls. ---
        y_all = jnp.dot(tb, wpw_all[...],
                        preferred_element_type=jnp.float32)         # [L, KK*td]
        yb = y_all.astype(jnp.bfloat16)

        # --- stage the per-kernel-position slabs into a [KK*L, td] scratch so
        #     the nn.Fold scatter-add becomes a single stacked matmul (the MXU
        #     performs the accumulation instead of KK VPU adds). ---
        for kk in range(KK):                                        # KK is small & static
            y_stack[kk * L:(kk + 1) * L, :] = yb[:, kk * td:(kk + 1) * td]

        folded = jnp.dot(f_stack[...], y_stack[...],
                         preferred_element_type=jnp.float32)        # [HW, td]

        # --- concatFuse: GELU(folded + enc @ w1e + bias1) @ w2 + b2
        #     (folded already carries w1d; bias1 = Fold(proj_bias) @ w1d + b1) ---
        hh = _gelu(folded
                   + jnp.dot(enc_ref[...], w1e[...],
                             preferred_element_type=jnp.float32)
                   + bias1[...])
        o = jnp.dot(hh.astype(jnp.bfloat16), w2[...],
                    preferred_element_type=jnp.float32) + b2[...]
        o_ref[...] = o.astype(o_ref.dtype)                          # [HW, td]
    return kernel


# ---------------------------------------------------------------------------
# fold geometry
# ---------------------------------------------------------------------------
def build_fold_matrix(H, W, k, s, p):
    """F3[kk, hw, l] == 1 iff block l at kernel offset kk lands on output pixel
    hw (exactly torch.nn.Fold's scatter-add).  F_stack is the same tensor
    flattened to [HW, KK*L] so the whole fold is one matmul against a
    row-stacked [KK*L, td] projection."""
    Lh = (H + 2 * p - k) // s + 1
    Lw = (W + 2 * p - k) // s + 1
    KK, Lnum = k * k, Lh * Lw
    F3 = np.zeros((KK, H * W, Lnum), dtype=np.float32)
    for bh in range(Lh):
        for bw in range(Lw):
            l = bh * Lw + bw
            for ki in range(k):
                for kj in range(k):
                    h = bh * s - p + ki
                    w = bw * s - p + kj
                    if 0 <= h < H and 0 <= w < W:
                        F3[ki * k + kj, h * W + w, l] = 1.0
    F_stack = F3.transpose(1, 0, 2).reshape(H * W, KK * Lnum)       # cols = kk*L + l
    return F3, F_stack


def prepare_params(raw, H, k, s, pad, apply_mlp=True):
    """Pre-permute / algebraically pre-fold the weights so the kernel needs no
    in-kernel transposes and fewer matmuls.  Assumes fuse=True."""
    # TODO(synk): fuse=False path (skip concatFuse) would need un-fused project
    # weights; not implemented.
    w2 = np.asarray(raw["w2"], np.float32)
    td = w2.shape[1]
    KK = k * k
    F3, F_stack = build_fold_matrix(H, H, k, s, pad)

    # nn.Fold's input channel layout is (c, kk): project column index = c*KK + kk
    wp = np.asarray(raw["wp"], np.float32)                    # [td, td*KK]
    bp = np.asarray(raw["bp"], np.float32).reshape(-1)        # [td*KK]
    w1d = np.asarray(raw["w1d"], np.float32)                  # [td, td] dec half of concatFuse L1
    b1 = np.asarray(raw["b1"], np.float32).reshape(1, -1)

    wp3 = wp.reshape(td, td, KK).transpose(2, 0, 1)           # [KK, td_in, td_out]
    wpw = np.einsum("kic,co->kio", wp3, w1d)                  # fold w1d into project
    wpw_all = wpw.transpose(1, 0, 2).reshape(td, KK * td)     # cols = kk*td + o

    bp_kc = bp.reshape(td, KK).T                              # [KK, td]
    counts = F3.sum(axis=2)                                   # [KK, HW]
    bias1 = (counts.T @ bp_kc) @ w1d + b1                     # [HW, td]  (proj bias -> Fold -> w1d) + b1

    bf = lambda a: jnp.asarray(a, jnp.bfloat16)
    f32 = lambda a: jnp.asarray(a, jnp.float32)
    params = {
        "wpw_all": bf(wpw_all),
        "f_stack": bf(F_stack),                               # 0/1 entries: exact in bf16
        "w1e": bf(raw["w1e"]),
        "bias1": f32(bias1),
        "w2": bf(w2),
        "b2": f32(np.asarray(raw["b2"], np.float32).reshape(1, -1)),
    }
    if apply_mlp:
        g = np.asarray(raw["ln_g"], np.float32).reshape(-1)
        b = np.asarray(raw["ln_b"], np.float32).reshape(-1)
        wm1 = np.asarray(raw["wm1"], np.float32)
        bm1 = np.asarray(raw["bm1"], np.float32).reshape(1, -1)
        params.update({
            "wm1g": bf(g[:, None] * wm1),                     # LN affine folded into MLP L1
            "bm1g": f32(b[None, :] @ wm1 + bm1),
            "wm2": bf(raw["wm2"]),
            "bm2": f32(np.asarray(raw["bm2"], np.float32).reshape(1, -1)),
        })
    return params


def _pick_vmem_limit():
    # generous on 128 MiB parts (v5e/v6e), conservative on 64 MiB v7x
    cap = 128 * 1024 * 1024
    try:
        cap = int(getattr(pltpu.get_tpu_info(), "vmem_capacity_bytes", cap))
    except Exception:
        pass
    return int(min(100 * 1024 * 1024, max(32 * 1024 * 1024, cap * 3 // 4)))


def decoder_forward(dec_fea, enc_fea, kparams, *, img_size, ratio, kernel_size,
                    apply_mlp):
    B, L, C_in = dec_fea.shape
    td = kparams["w2"].shape[1]
    KK = kernel_size[0] * kernel_size[1]
    H = img_size // ratio
    HW = H * H

    # activations are only consumed as bf16 MXU operands -> ship them as bf16
    if dec_fea.dtype != jnp.bfloat16:
        dec_fea = dec_fea.astype(jnp.bfloat16)
    if enc_fea.dtype != jnp.bfloat16:
        enc_fea = enc_fea.astype(jnp.bfloat16)

    if apply_mlp:
        weight_names = ["wm1g", "bm1g", "wm2", "bm2",
                        "wpw_all", "f_stack", "w1e", "bias1", "w2", "b2"]
    else:
        weight_names = ["wpw_all", "f_stack", "w1e", "bias1", "w2", "b2"]
    weights = [kparams[n] for n in weight_names]

    def bcast_spec(a):
        nd = a.ndim
        return pl.BlockSpec(a.shape, lambda b, _nd=nd: (0,) * _nd)

    in_specs = ([pl.BlockSpec((None, L, C_in), lambda b: (b, 0, 0)),
                 pl.BlockSpec((None, HW, td), lambda b: (b, 0, 0))]
                + [bcast_spec(w) for w in weights])

    kernel = _make_kernel(apply_mlp, KK, L, td)

    # advisory cost estimate for XLA's scheduler
    mlp_flops = (L * C_in * td + L * td * td) if apply_mlp else 0
    flops = int(2 * B * (mlp_flops
                         + L * td * (KK * td)        # merged project (+ w1d)
                         + HW * (KK * L) * td        # stacked fold matmul
                         + 2 * HW * td * td))        # enc @ w1e, hh @ w2
    transcendentals = int(B * ((L * td if apply_mlp else 0) + HW * td))
    bytes_accessed = int(dec_fea.size * 2 + enc_fea.size * 2 + B * HW * td * 4
                         + sum(int(w.size) * w.dtype.itemsize for w in weights))

    out = pl.pallas_call(
        kernel,
        out_shape=jax.ShapeDtypeStruct((B, HW, td), jnp.float32),
        grid=(B,),
        in_specs=in_specs,
        out_specs=pl.BlockSpec((None, HW, td), lambda b: (b, 0, 0)),
        scratch_shapes=[pltpu.VMEM((KK * L, td), jnp.bfloat16)],     # fold staging
        compiler_params=pltpu.CompilerParams(
            dimension_semantics=("parallel",),
            vmem_limit_bytes=_pick_vmem_limit()),
        cost_estimate=pl.CostEstimate(flops=flops,
                                      transcendentals=transcendentals,
                                      bytes_accessed=bytes_accessed),
    )(dec_fea, enc_fea, *weights)
    return out


# ---------------------------------------------------------------------------
# pure-JAX f32 reference of the original torch module semantics
# ---------------------------------------------------------------------------
def reference(dec, enc, p, F3, k):
    B, L, C = dec.shape
    KK = k * k
    x = dec
    if C == 384:
        mu = x.mean(-1, keepdims=True)
        var = ((x - mu) ** 2).mean(-1, keepdims=True)
        xn = (x - mu) / jnp.sqrt(var + _LN_EPS) * p["ln_g"][0] + p["ln_b"][0]
        h = _gelu(xn @ p["wm1"] + p["bm1"][0])
        x = h @ p["wm2"] + p["bm2"][0]
    td = p["w2"].shape[1]
    y = x @ p["wp"] + p["bp"][0]                       # [B, L, td*KK], cols (c, kk)
    yr = y.reshape(B, L, td, KK)
    folded = jnp.einsum("kol,blck->boc", F3, yr)       # torch.nn.Fold
    hh = _gelu(folded @ p["w1d"] + enc @ p["w1e"] + p["b1"][0])
    return hh @ p["w2"] + p["b2"][0]


if __name__ == "__main__":
    # small, self-consistent configuration: dim=384, token_dim=64, img_size=16,
    # ratio=2 -> fold output 8x8 (HW=64), L = 16 input tokens
    dim, td = 384, 64
    img_size, ratio = 16, 2
    k, s, pd = 3, 2, 1
    H = img_size // ratio
    Lh = (H + 2 * pd - k) // s + 1
    L = Lh * Lh
    HW = H * H
    B = 2
    KK = k * k

    key = jax.random.PRNGKey(0)
    keys = jax.random.split(key, 16)
    init = lambda kk_, shape: 0.05 * jax.random.normal(kk_, shape, jnp.float32)

    raw = {
        "ln_g": jnp.ones((1, dim), jnp.float32) + init(keys[0], (1, dim)),
        "ln_b": init(keys[1], (1, dim)),
        "wm1": init(keys[2], (dim, td)), "bm1": init(keys[3], (1, td)),
        "wm2": init(keys[4], (td, td)), "bm2": init(keys[5], (1, td)),
        "wp": init(keys[6], (td, td * KK)), "bp": init(keys[7], (1, td * KK)),
        "w1d": init(keys[8], (td, td)),   # concatFuse Linear(2*td, td), dec half
        "w1e": init(keys[9], (td, td)),   # concatFuse Linear(2*td, td), enc half
        "b1": init(keys[10], (1, td)),
        "w2": init(keys[11], (td, td)), "b2": init(keys[12], (1, td)),
    }

    dec_fea = jax.random.normal(keys[13], (B, L, dim), jnp.float32)
    enc_fea = jax.random.normal(keys[14], (B, HW, td), jnp.float32)
    dec_small = jax.random.normal(keys[15], (B, L, td), jnp.float32)   # C != 384 branch

    kparams = prepare_params(raw, H, k, s, pd, apply_mlp=True)

    # branch 1: LayerNorm -> MLP -> project -> Fold -> concatFuse
    out = decoder_forward(dec_fea.astype(jnp.bfloat16), enc_fea.astype(jnp.bfloat16),
                          kparams, img_size=img_size, ratio=ratio,
                          kernel_size=(k, k), apply_mlp=True)
    out = jax.block_until_ready(out)
    assert out.shape == (B, HW, td)

    # branch 2: project -> Fold -> concatFuse (no MLP)
    out2 = decoder_forward(dec_small.astype(jnp.bfloat16), enc_fea.astype(jnp.bfloat16),
                           kparams, img_size=img_size, ratio=ratio,
                           kernel_size=(k, k), apply_mlp=False)
    out2 = jax.block_until_ready(out2)
    assert out2.shape == (B, HW, td)

    # correctness vs. the f32 reference (bf16 operands -> loosened tolerance)
    F3_f32, _ = build_fold_matrix(H, H, k, s, pd)
    F3_f32 = jnp.asarray(F3_f32)
    ref1 = jax.block_until_ready(reference(dec_fea, enc_fea, raw, F3_f32, k))
    ref2 = jax.block_until_ready(reference(dec_small, enc_fea, raw, F3_f32, k))
    np.testing.assert_allclose(np.asarray(out), np.asarray(ref1), rtol=2e-2, atol=2e-2)
    np.testing.assert_allclose(np.asarray(out2), np.asarray(ref2), rtol=2e-2, atol=2e-2)
    print("KERNEL_OK")
</pallas_src>

<mosaic_0001>
module attributes {stable_mosaic.version = 11 : i64} {
  func.func @kernel(%arg0: i32, %arg1: memref<1x16x384xbf16, #tpu.memory_space<vmem>>, %arg2: memref<1x64x64xbf16, #tpu.memory_space<vmem>>, %arg3: memref<384x64xbf16, #tpu.memory_space<vmem>>, %arg4: memref<1x64xf32, #tpu.memory_space<vmem>>, %arg5: memref<64x64xbf16, #tpu.memory_space<vmem>>, %arg6: memref<1x64xf32, #tpu.memory_space<vmem>>, %arg7: memref<64x576xbf16, #tpu.memory_space<vmem>>, %arg8: memref<64x144xbf16, #tpu.memory_space<vmem>>, %arg9: memref<64x64xbf16, #tpu.memory_space<vmem>>, %arg10: memref<64x64xf32, #tpu.memory_space<vmem>>, %arg11: memref<64x64xbf16, #tpu.memory_space<vmem>>, %arg12: memref<1x64xf32, #tpu.memory_space<vmem>>, %arg13: memref<1x64x64xf32, #tpu.memory_space<vmem>>, %arg14: memref<144x64xbf16, #tpu.memory_space<vmem>>) attributes {dimension_semantics = [#tpu.dimension_semantics<parallel>], iteration_bounds = array<i64: 2>, scalar_prefetch = 0 : i64, scratch_operands = 1 : i64, tpu.core_type = #tpu.core_type<tc>, window_params = [{transform_indices = @transform_0, window_bounds = array<i64: 1, 16, 384>}, {transform_indices = @transform_1, window_bounds = array<i64: 1, 64, 64>}, {pipeline_mode = #tpu.pipeline_mode<synchronous>, transform_indices = @transform_2, window_bounds = array<i64: 384, 64>}, {pipeline_mode = #tpu.pipeline_mode<synchronous>, transform_indices = @transform_3, window_bounds = array<i64: 1, 64>}, {pipeline_mode = #tpu.pipeline_mode<synchronous>, transform_indices = @transform_4, window_bounds = array<i64: 64, 64>}, {pipeline_mode = #tpu.pipeline_mode<synchronous>, transform_indices = @transform_5, window_bounds = array<i64: 1, 64>}, {pipeline_mode = #tpu.pipeline_mode<synchronous>, transform_indices = @transform_6, window_bounds = array<i64: 64, 576>}, {pipeline_mode = #tpu.pipeline_mode<synchronous>, transform_indices = @transform_7, window_bounds = array<i64: 64, 144>}, {pipeline_mode = #tpu.pipeline_mode<synchronous>, transform_indices = @transform_8, window_bounds = array<i64: 64, 64>}, {pipeline_mode = #tpu.pipeline_mode<synchronous>, transform_indices = @transform_9, window_bounds = array<i64: 64, 64>}, {pipeline_mode = #tpu.pipeline_mode<synchronous>, transform_indices = @transform_10, window_bounds = array<i64: 64, 64>}, {pipeline_mode = #tpu.pipeline_mode<synchronous>, transform_indices = @transform_11, window_bounds = array<i64: 1, 64>}, {transform_indices = @transform_12, window_bounds = array<i64: 1, 64, 64>}]} {
    %c0 = arith.constant 0 : index
    %c0_0 = arith.constant 0 : index
    %c0_1 = arith.constant 0 : index
    %0 = vector.load %arg1[%c0, %c0_0, %c0_1] : memref<1x16x384xbf16, #tpu.memory_space<vmem>>, vector<1x16x384xbf16>
    %1 = vector.shape_cast %0 : vector<1x16x384xbf16> to vector<16x384xbf16>
    %2 = arith.extf %1 : vector<16x384xbf16> to vector<16x384xf32>
    %cst = arith.constant dense<0.000000e+00> : vector<16xf32>
    %3 = vector.multi_reduction <add>, %2, %cst [1] : vector<16x384xf32> to vector<16xf32>
    %4 = vector.shape_cast %3 : vector<16xf32> to vector<16x1xf32>
    %cst_2 = arith.constant 3.840000e+02 : f32
    %5 = vector.broadcast %cst_2 : f32 to vector<16x1xf32>
    %6 = arith.divf %4, %5 : vector<16x1xf32>
    %7 = vector.broadcast %6 : vector<16x1xf32> to vector<16x384xf32>
    %8 = arith.subf %2, %7 : vector<16x384xf32>
    %9 = vector.broadcast %6 : vector<16x1xf32> to vector<16x384xf32>
    %10 = arith.subf %2, %9 : vector<16x384xf32>
    %11 = arith.mulf %8, %10 : vector<16x384xf32>
    %cst_3 = arith.constant dense<0.000000e+00> : vector<16xf32>
    %12 = vector.multi_reduction <add>, %11, %cst_3 [1] : vector<16x384xf32> to vector<16xf32>
    %13 = vector.shape_cast %12 : vector<16xf32> to vector<16x1xf32>
    %cst_4 = arith.constant 3.840000e+02 : f32
    %14 = vector.broadcast %cst_4 : f32 to vector<16x1xf32>
    %15 = arith.divf %13, %14 : vector<16x1xf32>
    %16 = vector.broadcast %6 : vector<16x1xf32> to vector<16x384xf32>
    %17 = arith.subf %2, %16 : vector<16x384xf32>
    %cst_5 = arith.constant 9.99999974E-6 : f32
    %18 = vector.broadcast %cst_5 : f32 to vector<16x1xf32>
    %19 = arith.addf %15, %18 : vector<16x1xf32>
    %20 = math.rsqrt %19 : vector<16x1xf32>
    %21 = vector.broadcast %20 : vector<16x1xf32> to vector<16x384xf32>
    %22 = arith.mulf %17, %21 : vector<16x384xf32>
    %23 = arith.truncf %22 : vector<16x384xf32> to vector<16x384xbf16>
    %c0_6 = arith.constant 0 : index
    %c0_7 = arith.constant 0 : index
    %24 = vector.load %arg3[%c0_6, %c0_7] : memref<384x64xbf16, #tpu.memory_space<vmem>>, vector<384x64xbf16>
    %cst_8 = arith.constant dense<0.000000e+00> : vector<16x64xf32>
    %25 = tpu.matmul %23, %24, %cst_8 {dimension_numbers = #tpu.dot_dimension_numbers<[1], [0], [0], [1], [0, 0, 1, 1], [], []>} : vector<16x384xbf16>, vector<384x64xbf16>, vector<16x64xf32> -> vector<16x64xf32>
    %c0_9 = arith.constant 0 : index
    %c0_10 = arith.constant 0 : index
    %26 = vector.load %arg4[%c0_9, %c0_10] : memref<1x64xf32, #tpu.memory_space<vmem>>, vector<1x64xf32>
    %27 = vector.broadcast %26 : vector<1x64xf32> to vector<16x64xf32>
    %28 = arith.addf %25, %27 : vector<16x64xf32>
    %cst_11 = arith.constant 5.000000e-01 : f32
    %29 = vector.broadcast %cst_11 : f32 to vector<16x64xf32>
    %30 = arith.mulf %29, %28 : vector<16x64xf32>
    %cst_12 = arith.constant 0.707106769 : f32
    %31 = vector.broadcast %cst_12 : f32 to vector<16x64xf32>
    %32 = arith.mulf %28, %31 : vector<16x64xf32>
    %33 = math.erf %32 : vector<16x64xf32>
    %cst_13 = arith.constant 1.000000e+00 : f32
    %34 = vector.broadcast %cst_13 : f32 to vector<16x64xf32>
    %35 = arith.addf %34, %33 : vector<16x64xf32>
    %36 = arith.mulf %30, %35 : vector<16x64xf32>
    %37 = arith.truncf %36 : vector<16x64xf32> to vector<16x64xbf16>
    %c0_14 = arith.constant 0 : index
    %c0_15 = arith.constant 0 : index
    %38 = vector.load %arg5[%c0_14, %c0_15] : memref<64x64xbf16, #tpu.memory_space<vmem>>, vector<64x64xbf16>
    %cst_16 = arith.constant dense<0.000000e+00> : vector<16x64xf32>
    %39 = tpu.matmul %37, %38, %cst_16 {dimension_numbers = #tpu.dot_dimension_numbers<[1], [0], [0], [1], [0, 0, 1, 1], [], []>} : vector<16x64xbf16>, vector<64x64xbf16>, vector<16x64xf32> -> vector<16x64xf32>
    %c0_17 = arith.constant 0 : index
    %c0_18 = arith.constant 0 : index
    %40 = vector.load %arg6[%c0_17, %c0_18] : memref<1x64xf32, #tpu.memory_space<vmem>>, vector<1x64xf32>
    %41 = vector.broadcast %40 : vector<1x64xf32> to vector<16x64xf32>
    %42 = arith.addf %39, %41 : vector<16x64xf32>
    %43 = arith.truncf %42 : vector<16x64xf32> to vector<16x64xbf16>
    %c0_19 = arith.constant 0 : index
    %c0_20 = arith.constant 0 : index
    %44 = vector.load %arg7[%c0_19, %c0_20] : memref<64x576xbf16, #tpu.memory_space<vmem>>, vector<64x576xbf16>
    %cst_21 = arith.constant dense<0.000000e+00> : vector<16x576xf32>
    %45 = tpu.matmul %43, %44, %cst_21 {dimension_numbers = #tpu.dot_dimension_numbers<[1], [0], [0], [1], [0, 0, 1, 1], [], []>} : vector<16x64xbf16>, vector<64x576xbf16>, vector<16x576xf32> -> vector<16x576xf32>
    %46 = arith.truncf %45 : vector<16x576xf32> to vector<16x576xbf16>
    %47 = vector.extract_strided_slice %46 {offsets = [0, 0], sizes = [16, 64], strides = [1, 1]} : vector<16x576xbf16> to vector<16x64xbf16>
    %c0_22 = arith.constant 0 : index
    %c0_23 = arith.constant 0 : index
    %48 = vector.load %arg14[%c0_22, %c0_23] : memref<144x64xbf16, #tpu.memory_space<vmem>>, vector<16x64xbf16>
    tpu.vector_store %arg14[%c0_22, %c0_23], %47 {strides = array<i32>} : memref<144x64xbf16, #tpu.memory_space<vmem>>, vector<16x64xbf16>,
    %49 = vector.extract_strided_slice %46 {offsets = [0, 64], sizes = [16, 64], strides = [1, 1]} : vector<16x576xbf16> to vector<16x64xbf16>
    %c16 = arith.constant 16 : index
    %c0_24 = arith.constant 0 : index
    %50 = vector.load %arg14[%c16, %c0_24] : memref<144x64xbf16, #tpu.memory_space<vmem>>, vector<16x64xbf16>
    tpu.vector_store %arg14[%c16, %c0_24], %49 {strides = array<i32>} : memref<144x64xbf16, #tpu.memory_space<vmem>>, vector<16x64xbf16>,
    %51 = vector.extract_strided_slice %46 {offsets = [0, 128], sizes = [16, 64], strides = [1, 1]} : vector<16x576xbf16> to vector<16x64xbf16>
    %c32 = arith.constant 32 : index
    %c0_25 = arith.constant 0 : index
    %52 = vector.load %arg14[%c32, %c0_25] : memref<144x64xbf16, #tpu.memory_space<vmem>>, vector<16x64xbf16>
    tpu.vector_store %arg14[%c32, %c0_25], %51 {strides = array<i32>} : memref<144x64xbf16, #tpu.memory_space<vmem>>, vector<16x64xbf16>,
    %53 = vector.extract_strided_slice %46 {offsets = [0, 192], sizes = [16, 64], strides = [1, 1]} : vector<16x576xbf16> to vector<16x64xbf16>
    %c48 = arith.constant 48 : index
    %c0_26 = arith.constant 0 : index
    %54 = vector.load %arg14[%c48, %c0_26] : memref<144x64xbf16, #tpu.memory_space<vmem>>, vector<16x64xbf16>
    tpu.vector_store %arg14[%c48, %c0_26], %53 {strides = array<i32>} : memref<144x64xbf16, #tpu.memory_space<vmem>>, vector<16x64xbf16>,
    %55 = vector.extract_strided_slice %46 {offsets = [0, 256], sizes = [16, 64], strides = [1, 1]} : vector<16x576xbf16> to vector<16x64xbf16>
    %c64 = arith.constant 64 : index
    %c0_27 = arith.constant 0 : index
    %56 = vector.load %arg14[%c64, %c0_27] : memref<144x64xbf16, #tpu.memory_space<vmem>>, vector<16x64xbf16>
    tpu.vector_store %arg14[%c64, %c0_27], %55 {strides = array<i32>} : memref<144x64xbf16, #tpu.memory_space<vmem>>, vector<16x64xbf16>,
    %57 = vector.extract_strided_slice %46 {offsets = [0, 320], sizes = [16, 64], strides = [1, 1]} : vector<16x576xbf16> to vector<16x64xbf16>
    %c80 = arith.constant 80 : index
    %c0_28 = arith.constant 0 : index
    %58 = vector.load %arg14[%c80, %c0_28] : memref<144x64xbf16, #tpu.memory_space<vmem>>, vector<16x64xbf16>
    tpu.vector_store %arg14[%c80, %c0_28], %57 {strides = array<i32>} : memref<144x64xbf16, #tpu.memory_space<vmem>>, vector<16x64xbf16>,
    %59 = vector.extract_strided_slice %46 {offsets = [0, 384], sizes = [16, 64], strides = [1, 1]} : vector<16x576xbf16> to vector<16x64xbf16>
    %c96 = arith.constant 96 : index
    %c0_29 = arith.constant 0 : index
    %60 = vector.load %arg14[%c96, %c0_29] : memref<144x64xbf16, #tpu.memory_space<vmem>>, vector<16x64xbf16>
    tpu.vector_store %arg14[%c96, %c0_29], %59 {strides = array<i32>} : memref<144x64xbf16, #tpu.memory_space<vmem>>, vector<16x64xbf16>,
    %61 = vector.extract_strided_slice %46 {offsets = [0, 448], sizes = [16, 64], strides = [1, 1]} : vector<16x576xbf16> to vector<16x64xbf16>
    %c112 = arith.constant 112 : index
    %c0_30 = arith.constant 0 : index
    %62 = vector.load %arg14[%c112, %c0_30] : memref<144x64xbf16, #tpu.memory_space<vmem>>, vector<16x64xbf16>
    tpu.vector_store %arg14[%c112, %c0_30], %61 {strides = array<i32>} : memref<144x64xbf16, #tpu.memory_space<vmem>>, vector<16x64xbf16>,
    %63 = vector.extract_strided_slice %46 {offsets = [0, 512], sizes = [16, 64], strides = [1, 1]} : vector<16x576xbf16> to vector<16x64xbf16>
    %c128 = arith.constant 128 : index
    %c0_31 = arith.constant 0 : index
    %64 = vector.load %arg14[%c128, %c0_31] : memref<144x64xbf16, #tpu.memory_space<vmem>>, vector<16x64xbf16>
    tpu.vector_store %arg14[%c128, %c0_31], %63 {strides = array<i32>} : memref<144x64xbf16, #tpu.memory_space<vmem>>, vector<16x64xbf16>,
    %c0_32 = arith.constant 0 : index
    %c0_33 = arith.constant 0 : index
    %65 = vector.load %arg8[%c0_32, %c0_33] : memref<64x144xbf16, #tpu.memory_space<vmem>>, vector<64x144xbf16>
    %c0_34 = arith.constant 0 : index
    %c0_35 = arith.constant 0 : index
    %66 = vector.load %arg14[%c0_34, %c0_35] : memref<144x64xbf16, #tpu.memory_space<vmem>>, vector<144x64xbf16>
    %cst_36 = arith.constant dense<0.000000e+00> : vector<64x64xf32>
    %67 = tpu.matmul %65, %66, %cst_36 {dimension_numbers = #tpu.dot_dimension_numbers<[1], [0], [0], [1], [0, 0, 1, 1], [], []>} : vector<64x144xbf16>, vector<144x64xbf16>, vector<64x64xf32> -> vector<64x64xf32>
    %c0_37 = arith.constant 0 : index
    %c0_38 = arith.constant 0 : index
    %c0_39 = arith.constant 0 : index
    %68 = vector.load %arg2[%c0_37, %c0_38, %c0_39] : memref<1x64x64xbf16, #tpu.memory_space<vmem>>, vector<1x64x64xbf16>
    %69 = vector.shape_cast %68 : vector<1x64x64xbf16> to vector<64x64xbf16>
    %c0_40 = arith.constant 0 : index
    %c0_41 = arith.constant 0 : index
    %70 = vector.load %arg9[%c0_40, %c0_41] : memref<64x64xbf16, #tpu.memory_space<vmem>>, vector<64x64xbf16>
    %cst_42 = arith.constant dense<0.000000e+00> : vector<64x64xf32>
    %71 = tpu.matmul %69, %70, %cst_42 {dimension_numbers = #tpu.dot_dimension_numbers<[1], [0], [0], [1], [0, 0, 1, 1], [], []>} : vector<64x64xbf16>, vector<64x64xbf16>, vector<64x64xf32> -> vector<64x64xf32>
    %72 = arith.addf %67, %71 : vector<64x64xf32>
    %c0_43 = arith.constant 0 : index
    %c0_44 = arith.constant 0 : index
    %73 = vector.load %arg10[%c0_43, %c0_44] : memref<64x64xf32, #tpu.memory_space<vmem>>, vector<64x64xf32>
    %74 = arith.addf %72, %73 : vector<64x64xf32>
    %cst_45 = arith.constant 5.000000e-01 : f32
    %75 = vector.broadcast %cst_45 : f32 to vector<64x64xf32>
    %76 = arith.mulf %75, %74 : vector<64x64xf32>
    %cst_46 = arith.constant 0.707106769 : f32
    %77 = vector.broadcast %cst_46 : f32 to vector<64x64xf32>
    %78 = arith.mulf %74, %77 : vector<64x64xf32>
    %79 = math.erf %78 : vector<64x64xf32>
    %cst_47 = arith.constant 1.000000e+00 : f32
    %80 = vector.broadcast %cst_47 : f32 to vector<64x64xf32>
    %81 = arith.addf %80, %79 : vector<64x64xf32>
    %82 = arith.mulf %76, %81 : vector<64x64xf32>
    %83 = arith.truncf %82 : vector<64x64xf32> to vector<64x64xbf16>
    %c0_48 = arith.constant 0 : index
    %c0_49 = arith.constant 0 : index
    %84 = vector.load %arg11[%c0_48, %c0_49] : memref<64x64xbf16, #tpu.memory_space<vmem>>, vector<64x64xbf16>
    %cst_50 = arith.constant dense<0.000000e+00> : vector<64x64xf32>
    %85 = tpu.matmul %83, %84, %cst_50 {dimension_numbers = #tpu.dot_dimension_numbers<[1], [0], [0], [1], [0, 0, 1, 1], [], []>} : vector<64x64xbf16>, vector<64x64xbf16>, vector<64x64xf32> -> vector<64x64xf32>
    %c0_51 = arith.constant 0 : index
    %c0_52 = arith.constant 0 : index
    %86 = vector.load %arg12[%c0_51, %c0_52] : memref<1x64xf32, #tpu.memory_space<vmem>>, vector<1x64xf32>
    %87 = vector.broadcast %86 : vector<1x64xf32> to vector<64x64xf32>
    %88 = arith.addf %85, %87 : vector<64x64xf32>
    %c0_53 = arith.constant 0 : index
    %c0_54 = arith.constant 0 : index
    %c0_55 = arith.constant 0 : index
    %89 = vector.load %arg13[%c0_53, %c0_54, %c0_55] : memref<1x64x64xf32, #tpu.memory_space<vmem>>, vector<1x64x64xf32>
    %90 = vector.shape_cast %89 : vector<1x64x64xf32> to vector<64x64xf32>
    %91 = vector.shape_cast %88 : vector<64x64xf32> to vector<1x64x64xf32>
    tpu.vector_store %arg13[%c0_53, %c0_54, %c0_55], %91 {strides = array<i32>} : memref<1x64x64xf32, #tpu.memory_space<vmem>>, vector<1x64x64xf32>,
    return
  }
  func.func @transform_0(%arg0: i32) -> (i32, i32, i32) {
    %c0_i32 = arith.constant 0 : i32
    %c0_i32_0 = arith.constant 0 : i32
    %c0_i32_1 = arith.constant 0 : i32
    return %arg0, %c0_i32, %c0_i32_0 : i32, i32, i32
  }
  func.func @transform_1(%arg0: i32) -> (i32, i32, i32) {
    %c0_i32 = arith.constant 0 : i32
    %c0_i32_0 = arith.constant 0 : i32
    %c0_i32_1 = arith.constant 0 : i32
    return %arg0, %c0_i32, %c0_i32_0 : i32, i32, i32
  }
  func.func @transform_2(%arg0: i32) -> (i32, i32) {
    %c0_i32 = arith.constant 0 : i32
    %c0_i32_0 = arith.constant 0 : i32
    %c0_i32_1 = arith.constant 0 : i32
    return %c0_i32, %c0_i32_0 : i32, i32
  }
  func.func @transform_3(%arg0: i32) -> (i32, i32) {
    %c0_i32 = arith.constant 0 : i32
    %c0_i32_0 = arith.constant 0 : i32
    %c0_i32_1 = arith.constant 0 : i32
    return %c0_i32, %c0_i32_0 : i32, i32
  }
  func.func @transform_4(%arg0: i32) -> (i32, i32) {
    %c0_i32 = arith.constant 0 : i32
    %c0_i32_0 = arith.constant 0 : i32
    %c0_i32_1 = arith.constant 0 : i32
    return %c0_i32, %c0_i32_0 : i32, i32
  }
  func.func @transform_5(%arg0: i32) -> (i32, i32) {
    %c0_i32 = arith.constant 0 : i32
    %c0_i32_0 = arith.constant 0 : i32
    %c0_i32_1 = arith.constant 0 : i32
    return %c0_i32, %c0_i32_0 : i32, i32
  }
  func.func @transform_6(%arg0: i32) -> (i32, i32) {
    %c0_i32 = arith.constant 0 : i32
    %c0_i32_0 = arith.constant 0 : i32
    %c0_i32_1 = arith.constant 0 : i32
    return %c0_i32, %c0_i32_0 : i32, i32
  }
  func.func @transform_7(%arg0: i32) -> (i32, i32) {
    %c0_i32 = arith.constant 0 : i32
    %c0_i32_0 = arith.constant 0 : i32
    %c0_i32_1 = arith.constant 0 : i32
    return %c0_i32, %c0_i32_0 : i32, i32
  }
  func.func @transform_8(%arg0: i32) -> (i32, i32) {
    %c0_i32 = arith.constant 0 : i32
    %c0_i32_0 = arith.constant 0 : i32
    %c0_i32_1 = arith.constant 0 : i32
    return %c0_i32, %c0_i32_0 : i32, i32
  }
  func.func @transform_9(%arg0: i32) -> (i32, i32) {
    %c0_i32 = arith.constant 0 : i32
    %c0_i32_0 = arith.constant 0 : i32
    %c0_i32_1 = arith.constant 0 : i32
    return %c0_i32, %c0_i32_0 : i32, i32
  }
  func.func @transform_10(%arg0: i32) -> (i32, i32) {
    %c0_i32 = arith.constant 0 : i32
    %c0_i32_0 = arith.constant 0 : i32
    %c0_i32_1 = arith.constant 0 : i32
    return %c0_i32, %c0_i32_0 : i32, i32
  }
  func.func @transform_11(%arg0: i32) -> (i32, i32) {
    %c0_i32 = arith.constant 0 : i32
    %c0_i32_0 = arith.constant 0 : i32
    %c0_i32_1 = arith.constant 0 : i32
    return %c0_i32, %c0_i32_0 : i32, i32
  }
  func.func @transform_12(%arg0: i32) -> (i32, i32, i32) {
    %c0_i32 = arith.constant 0 : i32
    %c0_i32_0 = arith.constant 0 : i32
    %c0_i32_1 = arith.constant 0 : i32
    return %arg0, %c0_i32, %c0_i32_0 : i32, i32, i32
  }
}

</mosaic_0001>

<bundles_post_ra>
// kernel: tpu_custom_call.1
= control target key start
LH: loop header
LB: loop body
LE: loop exit
PB: predicated region body
PF: predicated region fallthrough
CT: control target
= control target key end

     0   :  { %s3214_s0 = inlined_call_operand.hbm [shape: bf16[2,16,384], index: 0, kind: input, shape index: {}]   ;;  %s3215_s1 = inlined_call_operand.vmem [shape: bf16[2,64,64], index: 1, kind: input, shape index: {}]   ;;  %s3216_s2 = inlined_call_operand.vmem [shape: bf16[384,64], index: 2, kind: input, shape index: {}]   ;;  %s3217_s3 = inlined_call_operand.vmem [shape: f32[1,64], index: 3, kind: input, shape index: {}]   ;;  %s3218_s4 = inlined_call_operand.hbm [shape: bf16[64,64], index: 4, kind: input, shape index: {}]   ;;  %s3219_s5 = inlined_call_operand.vmem [shape: f32[1,64], index: 5, kind: input, shape index: {}]   ;;  %s3220_s6 = inlined_call_operand.vmem [shape: bf16[64,576], index: 6, kind: input, shape index: {}]   ;;  %s3221_s7 = inlined_call_operand.vmem [shape: bf16[64,144], index: 7, kind: input, shape index: {}]   ;;  %s3222_s8 = inlined_call_operand.hbm [shape: bf16[64,64], index: 8, kind: input, shape index: {}]   ;;  %s3223_s9 = inlined_call_operand.hbm [shape: f32[64,64], index: 9, kind: input, shape index: {}]   ;;  %s3224_s10 = inlined_call_operand.hbm [shape: bf16[64,64], index: 10, kind: input, shape index: {}]   ;;  %s3225_s11 = inlined_call_operand.vmem [shape: f32[1,64], index: 11, kind: input, shape index: {}]   ;;  %s3226_s12 = inlined_call_operand.hbm [shape: f32[2,64,64], index: 12, kind: output, shape index: {}]  }
   0x1   :  { %3237 = sst [smem:[#allocation19_spill]] %s3218_s4 }
   0x2   :  { %3238 = sst [smem:[#allocation20_spill]] %s3222_s8 }
   0x3   :  { %3239 = sst [smem:[#allocation21_spill]] %s3223_s9 }
   0x4   :  { %3240 = sst [smem:[#allocation22_spill]] %s3224_s10 }
   0x5   :  { %17 = vsyncpa [#allocation4], 0 }
   0x6   :  { %19 = vsyncpa [#allocation4 + $0x1], 0 }
   0x7   :  { %20 = vsyncpa [#allocation7], 0 }
   0x8   :  { %21 = vsyncpa [#allocation10], 0 }
   0x9   :  { %22 = vsyncpa [#allocation5], 0 }
   0xa   :  { %24 = vsyncpa [#allocation5 + $0x1], 0  ;;  %s2721_s21 = smov 0   ;;  %s2723_s22 = smov 0  }
   0xb   :  { %s2725_s23 = smov 0   ;;  %s2727_s24 = smov 0  }
   0xc LB: > { %3241 = sst [smem:[#allocation17_spill]] %s2624_s21  ;;  %s2742_s25 = sadd.s32 4294967295, %s2636_s24   ;;  %s2636_s24 = sphi %s2727_s24, %s3270_s24   ;;  %s2632_s23 = sphi %s2725_s23, %s3269_s23   ;;  %s2628_s22 = sphi %s2723_s22, %s3268_s22   ;;  %s2624_s21 = sphi %s2721_s21, %s3267_s21  }
   0xd   : > { %s1937_s26 = sadd.s32 4294967294, %s2636_s24   ;;  %p50_p0 = scmp.ne.s32.totalorder %s2628_s22, %s2624_s21 }
   0xe   : > { %p3233_p1 = scmp.eq.s32.totalorder %s2742_s25, 0  ;;  %p316_p3 = scmp.eq.s32.totalorder %s1937_s26, 1 }
   0xf   : > { %p1938_p5 = scmp.ge.s32.totalorder %s2636_s24, 1  ;;  %p323_p7 = scmp.lt.s32.totalorder %s2636_s24, 3 }
  0x10   : > { %p2751_p4 = por %p3233_p1, %p50_p0  ;;  %p2756_p6 = por %p316_p3, %p50_p0 }
  0x11   : > { %p2761_p8 = pnand %p1938_p5, %p323_p7  ;;  %s2638_s30 = smov [#allocation6]  }
  0x12   : > { %s3242_s27 = scalar_select %p2751_p4, 1, 0 }
  0x13   : > { %s3243_s28 = scalar_select %p2756_p6, 1, 0 }
  0x14   : > { %s3245_s29 = scalar_select %p2761_p8, 1, 0 }
  0x15   : > { %3244 = sst [smem:[#allocation18_spill]] %s3243_s28  ;;  %s341_s13 = sshll.u32 %s2638_s30, 4  ;;  %s342_s13 = int_to_ptr.vmem [resolvable:$true] %s341_s13 }
  0x16   : > { %p2240_p9 = pneg %p2761_p8  ;;  %s2639_s15 = smov [#allocation9]  }
  0x17   : > { %s376_s16 = sshll.u32 %s2639_s15, 4  ;;  %s2443_s17 = scalar_lea.vmem %s342_s13, 512  ;;  %s377_s16 = int_to_ptr.vmem [resolvable:$true] %s376_s16 }
  0x18   : > { %p2770_p11 = pnand %p2240_p9, %p3233_p1  ;;  %p2444_p13 = scmp.ne.s32.totalorder %s342_s13, %s2443_s17 }
  0x19   : > { %p2451_p5 = scmp.lt.s32.totalorder %s342_s13, %s342_s13  ;;  %p2452_p7 = scmp.lt.s32.totalorder %s2443_s17, %s2443_s17 }
  0x1a   : > { %p2434_p12 = pneg %p2770_p11 }
  0x1b   : > { %p2453_p10 = por %p2452_p7, %p2451_p5 }
  0x1c   : > { %p2446_p0 = pnand %p2444_p13, %p2434_p12 }
  0x1e   : > { %p2447_p3 = pneg %p2446_p0 }
  0x20   : > { %p2454_p9 = pnand %p2453_p10, %p2447_p3 }
  0x22   : > { %2457 = shalt.err (!%p2454_p9)
}
  0x23   : > { %s3229_s18 = smov 64   ;;  %s3231_s19 = smov 4  }
  0x24   : > { %s3247_s4 = sld [smem:[#allocation19_spill]]  ;;  %s2469_s30 = scalar_lea.vmem %s377_s16, 1024 }
  0x25   : > { %p2470_p13 = scmp.ne.s32.totalorder %s377_s16, %s2469_s30  ;;  %p2477_p10 = scmp.lt.s32.totalorder %s377_s16, %s377_s16 }
  0x26   : > { %p2478_p3 = scmp.lt.s32.totalorder %s2469_s30, %s2469_s30 }
  0x27   : > { %p2472_p0 = pnand %p2470_p13, %p2434_p12 }
  0x28   : > { %p2479_p7 = por %p2478_p3, %p2477_p10 }
  0x29   : > { %p2473_p5 = pneg %p2472_p0 }
  0x2a   : > { %2243 = dma.hbm_to_vmem [thread:$0]  (!%p2770_p11), %s3247_s4, 512, %s342_s13, [#allocation7], %s3229_s18, %s3229_s18, %s3231_s19  }
  0x2b   : > { %p2480_p9 = pnand %p2479_p7, %p2473_p5 }
  0x2d   : > { %2483 = shalt.err (!%p2480_p9)
}
  0x2e   : > { %s2642_s15 = smov 128   ;;  %s2643_s17 = smov 8  }
  0x2f   : > { %s3248_s9 = sld [smem:[#allocation21_spill]]  ;;  %s2644_s13 = smov [#allocation8]  }
  0x30   : > { %s363_s20 = sshll.u32 %s2644_s13, 4  ;;  %s2645_s26 = smov [#allocation11]   ;;  %s364_s20 = int_to_ptr.vmem [resolvable:$true] %s363_s20 }
  0x31   : > { %s389_s18 = sshll.u32 %s2645_s26, 4  ;;  %s2495_s19 = scalar_lea.vmem %s364_s20, 512  ;;  %s390_s18 = int_to_ptr.vmem [resolvable:$true] %s389_s18 }
  0x32   : > { %p2496_p13 = scmp.ne.s32.totalorder %s364_s20, %s2495_s19  ;;  %p2503_p10 = scmp.lt.s32.totalorder %s364_s20, %s364_s20 }
  0x33   : > { %p2504_p3 = scmp.lt.s32.totalorder %s2495_s19, %s2495_s19 }
  0x34   : > { %p2498_p0 = pnand %p2496_p13, %p2434_p12 }
  0x35   : > { %2249 = dma.hbm_to_vmem [thread:$0]  (!%p2770_p11), %s3248_s9, 1024, %s377_s16, [#allocation10], %s2642_s15, %s2642_s15, %s2643_s17  }
  0x36   : > { %p2499_p5 = pneg %p2498_p0  ;;  %p2505_p7 = por %p2504_p3, %p2503_p10 }
  0x38   : > { %p2506_p9 = pnand %p2505_p7, %p2499_p5 }
  0x3a   : > { %2509 = shalt.err (!%p2506_p9)
}
  0x3b   : > { %s3249_s21 = smov 4   ;;  %s3250_s28 = smov 64  }
  0x3c   : > { %s3251_s8 = sld [smem:[#allocation20_spill]]  ;;  %s2521_s15 = scalar_lea.vmem %s390_s18, 512 }
  0x3d   : > { %p2522_p1 = scmp.ne.s32.totalorder %s390_s18, %s2521_s15  ;;  %p2529_p2 = scmp.lt.s32.totalorder %s390_s18, %s390_s18 }
  0x3e   : > { %p2530_p10 = scmp.lt.s32.totalorder %s2521_s15, %s2521_s15 }
  0x3f   : > { %p2524_p13 = pnand %p2522_p1, %p2434_p12 }
  0x40   : > { %p2531_p5 = por %p2530_p10, %p2529_p2 }
  0x41   : > { %p2525_p0 = pneg %p2524_p13 }
  0x42   : > { %2246 = dma.hbm_to_vmem [thread:$0]  (!%p2770_p11), %s3251_s8, 512, %s364_s20, [#allocation7], %s3250_s28, %s3250_s28, %s3249_s21  }
  0x43   : > { %p2532_p3 = pnand %p2531_p5, %p2525_p0 }
  0x45   : > { %2535 = shalt.err (!%p2532_p3)
}
  0x46   : > { %s3252_s10 = sld [smem:[#allocation22_spill]]  ;;  %s2818_s13 = sadd.s32 1, %s2636_s24  }
  0x47   : > { %s34_s14 = ssub.s32 %s2636_s24, %s2818_s13  ;;  %s37_s20 = sadd.s32 1, %s2632_s23 }
  0x48   : > { %p35_p1 = scmp.eq.s32.totalorder %s34_s14, 0  ;;  %p44_p2 = scmp.ne.s32.totalorder %s2632_s23, %s2628_s22 }
  0x49   : > { %p45_p12 = scmp.eq.s32.totalorder %s2636_s24, 0  ;;  %p3253_p9 = scmp.eq.s32.totalorder %s2742_s25, 1 }
  0x4a   : > { %s2827_s26 = scalar_select %p35_p1, %s2632_s23, %s37_s20  }
  0x4b   : > { %p46_p7 = por %p45_p12, %p44_p2  ;;  %p2831_p13 = por %p3253_p9, %p44_p2 }
  0x4c   : > { %2252 = dma.hbm_to_vmem [thread:$0]  (!%p2770_p11), %s3252_s10, 512, %s390_s18, [#allocation10], %s3250_s28, %s3250_s28, %s3249_s21  }
  0x4d   : > { %s3254_s16 = scalar_select %p2831_p13, 1, 0 }
  0x4e   : > { %p2265_p0 = scmp.lt.s32.totalorder %s2636_s24, 2  ;;  %s406_s30 = sand.u32 1, %s2632_s23  }
  0x4f   : > { %s2217_s15 = smul.u32 24, %s406_s30  ;;  %s2849_s4 = scalar_lea.sflag [#allocation4], %s406_s30 }
  0x50   : > { %s2218_s18 = smul.u32 384, %s2636_s24  ;;  %p2838_p11 = pnand %p2265_p0, %p46_p7 }
  0x51   : > { %s410_s14 = scalar_lea.vmem [#allocation3], %s2217_s15 }
  0x52   : > { %s2845_s17 = scalar_lea.hbm %s3214_s0, %s2218_s18  ;;  %s417_s20 = sshll.u32 %s410_s14, 4  ;;  %s2847_s20 = int_to_ptr.vmem [resolvable:$true] %s417_s20 }
  0x53   : > { %s2536_s8 = scalar_lea.hbm %s2845_s17, 384  ;;  %p2538_p5 = pneg %p2838_p11 }
  0x54   : > { %p2537_p10 = scmp.ne.s32.totalorder %s2845_s17, %s2536_s8  ;;  %s2541_s18 = scalar_lea.hbm %s3214_s0, 768 }
  0x55   : > { %p2542_p2 = scmp.lt.s32.totalorder %s2845_s17, %s3214_s0  ;;  %p2543_p12 = scmp.lt.s32.totalorder %s2541_s18, %s2536_s8 }
  0x56   : > { %p2539_p3 = pnand %p2538_p5, %p2537_p10 }
  0x57   : > { %p2544_p7 = por %p2543_p12, %p2542_p2 }
  0x58   : > { %p2540_p1 = pneg %p2539_p3 }
  0x5a   : > { %p2545_p9 = pnand %p2544_p7, %p2540_p1 }
  0x5c   : > { %2548 = shalt.err (!%p2545_p9)
}
  0x5d   : > { %s2549_s30 = scalar_lea.vmem %s2847_s20, 384  ;;  %s2646_s15 = smov [#allocation3]  }
  0x5e   : > { %p2550_p0 = scmp.ne.s32.totalorder %s2847_s20, %s2549_s30  ;;  %s2554_s14 = sshll.u32 %s2646_s15, 4  ;;  %s2555_s14 = int_to_ptr.vmem [resolvable:$false] %s2554_s14 }
  0x5f   : > { %s2556_s9 = scalar_lea.vmem %s2555_s14, 768  ;;  %p2557_p3 = scmp.lt.s32.totalorder %s2847_s20, %s2555_s14 }
  0x60   : > { %p2552_p6 = pnand %p2550_p0, %p2538_p5  ;;  %p2558_p13 = scmp.lt.s32.totalorder %s2556_s9, %s2549_s30 }
  0x62   : > { %p2553_p10 = pneg %p2552_p6  ;;  %p2559_p4 = por %p2558_p13, %p2557_p3 }
  0x64   : > { %p2560_p8 = pnand %p2559_p4, %p2553_p10 }
  0x66   : > { %2563 = shalt.err (!%p2560_p8)
}
  0x67   : > { %s2647_s8 = smov 192   ;;  %s2648_s10 = smov 12  }
  0x68   : > { %2256 = dma.hbm_to_vmem [thread:$0]  (!%p2838_p11), %s2845_s17, 384, %s2847_s20, %s2849_s4, %s2647_s8, %s2647_s8, %s2648_s10  }
  0x69   : > { %p3256_p5 = scmp.ne.s32.totalorder %s3245_s29, 0 }
  0x6a   : > { %s2873_s28 = sand.u32 (!%p3256_p5), 1, %s2628_s22   ;;  %p3257_p4 = scmp.ne.s32.totalorder (!%p3256_p5), %s3242_s27, 0 }
  0x6b   : > { %437 = sbr.rel (%p3256_p5) target bundleno = 1704 (0x6a8), region = 68  ;;  %s440_s19 = scalar_lea.sflag (!%p3256_p5), [#allocation4], %s2873_s28 }
  0x6c   : > { %s2219_s18 = smul.u32 (!%p3256_p5), 24, %s2873_s28 }
  0x6e   : > { %s443_s30 = scalar_lea.vmem (!%p3256_p5), [#allocation3], %s2219_s18 }
  0x70   : > { %2607 = dma.done.wait (%p3257_p4), %s440_s19, 384  }
  0x71   : > { %2609 = vsyncadd (%p3257_p4), %s440_s19, 4294966912  ;;  %p3258_p6 = scmp.eq.s32.totalorder %s2742_s25, 0 }
  0x73   : > { %2611 = dma.done.wait (%p3258_p6), [#allocation7], 1024   ;;  %p3259_p8 = pmov %p3258_p6 }
  0x74   : > { %p3260_p13 = pmov %p3258_p6 }
  0x75   : > { %2613 = vsyncadd (%p3259_p8), [#allocation7], 4294966272 }
  0x76   : > { %2615 = dma.done.wait (%p3260_p13), [#allocation10], 1536   ;;  %p3261_p11 = pmov %p3258_p6 }
  0x77   : > { %v511_v0 = vld [vmem:[%s443_s30] sm:$0xff]  ;;  %v512_v1 = vld [vmem:[%s443_s30 + $0x8] ss:$12 sps:$4 sm:$0xff]   ;;  %v513_v2 = vld [vmem:[%s443_s30 + $0xc] sm:$0xff]  ;;  %v2649_v16 = vmov 0.0   ;;  %vm2650_vm0 = vmmov 0  }
  0x78   : > { %2617 = vsyncadd (%p3261_p11), [#allocation10], 4294965760  ;;  %v515_v3 = vunpack.c.l.bf16 %v511_v0  ;;  %v516_v4 = vunpack.c.h.bf16 %v511_v0  ;;  %v517_v5 = vunpack.c.l.bf16 %v512_v1  ;;  %v518_v6 = vunpack.c.l.bf16 %v513_v2  ;;  %v2319_v13 = vld [vmem:[%s3216_s2 + $0x78] sm:$0xff]   ;;  %2133 = vmatprep.subr.bf16.mxu1 %v2649_v16  ;;  %v2322_v17 = vld [vmem:[%s3216_s2 + $0x70] sm:$0xff]   ;;  %2149 = vmatprep.mubr.msk.bf16.mxu1 %vm2650_vm0, %v2649_v16  ;;  %s2652_s9 = smov 64   ;;  %p505_p1 = scmp.lt.s32.totalorder %s2742_s25, 1 }
  0x79   : > { %v519_v7 = vunpack.c.h.bf16 %v513_v2  ;;  %v520_v9 = vunpack.c.h.bf16 %v512_v1  ;;  %v2320_v14 = vld [vmem:[%s3216_s2 + $0xb8] sm:$0xff]   ;;  %v2323_v18 = vld [vmem:[%s3216_s2 + $0xb0] sm:$0xff]   ;;  %2076 = vmatprep.subr.bf16.mxu0 %v2319_v13  ;;  %v2325_v40 = vld [vmem:[%s3216_s2 + $0x68] sm:$0xff]   ;;  %vm898_vm1 = vcmask 523264   ;;  %vm1214_vm2 = vcmask 519168   ;;  %s1950_s29 = sshll.u32 %s2873_s28, 6 }
  0x7a   : > { %v521_v8 = vadd.f32 %v516_v4, %v515_v3  ;;  %v2321_v15 = vld [vmem:[%s3216_s2 + $0x38] sm:$0xff]   ;;  %2134 = vmatpush3.bf16.msra.mxu1 %v2320_v14  ;;  %v2324_v39 = vld [vmem:[%s3216_s2 + $0x30] sm:$0xff]   ;;  %v2326_v41 = vld [vmem:[%s3216_s2 + $0xa8] sm:$0xff]   ;;  %s506_s8 = scalar_select %p505_p1, %s2742_s25, 1  ;;  %vm1538_vm3 = vcmask 130048  }
  0x7b   : > { %v525_v10 = vadd.f32 %v519_v7, %v518_v6  ;;  %2077 = vmatpush3.bf16.msra.mxu0 %v2321_v15  ;;  %2135 = vmatprep.subr.bf16.mxu1 %v2649_v16  ;;  %v2327_v42 = vld [vmem:[%s3216_s2 + $0x28] sm:$0xff]   ;;  %v2328_v43 = vld [vmem:[%s3216_s2 + $0x60] sm:$0xff]   ;;  %v2331_v46 = vld [vmem:[%s3216_s2 + $0x58] sm:$0xff]   ;;  %s504_s20 = scalar_lea.vmem [#allocation12], %s1950_s29  ;;  %s2075_s15 = sshll.u32 %s2742_s25, 10 }
  0x7c   : > { %v522_v11 = vadd.f32 %v521_v8, %v517_v5  ;;  %2078 = vmatprep.subr.bf16.mxu0 %v2322_v17  ;;  %v2329_v44 = vld [vmem:[%s3216_s2 + $0xa0] sm:$0xff]   ;;  %v2332_v47 = vld [vmem:[%s3216_s2 + $0x98] sm:$0xff]   ;;  %v2334_v49 = vld [vmem:[%s3216_s2 + $0x50] sm:$0xff]   ;;  %s2064_s10 = sshll.u32 %s506_s8, 5  ;;  %s1814_s14 = sshll.u32 %s504_s20, 4  ;;  %s3169_s14 = int_to_ptr.vmem [resolvable:$true] %s1814_s14 }
  0x7d   : > { %v526_v12 = vadd.f32 %v525_v10, %v520_v9  ;;  %v2330_v45 = vld [vmem:[%s3216_s2 + $0x20] sm:$0xff]   ;;  %v2333_v48 = vld [vmem:[%s3216_s2 + $0x18] sm:$0xff]   ;;  %v2335_v50 = vld [vmem:[%s3216_s2 + $0x90] sm:$0xff]   ;;  %s509_s30 = scalar_lea.vmem %s3215_s1, %s2064_s10  ;;  %s3167_s10 = scalar_lea.hbm %s3226_s12, %s2075_s15 }
  0x7e   : > { %523 = vadd.xlane.f32.xlu0 %v522_v11  ;;  %2136 = vmatpush3.bf16.msra.mxu1 %v2323_v18  ;;  %v2336_v51 = vld [vmem:[%s3216_s2 + $0x10] sm:$0xff]   ;;  %v2337_v52 = vld [vmem:[%s3216_s2 + $0x48] sm:$0xff]   ;;  %v2340_v55 = vld [vmem:[%s3216_s2 + $0x40] sm:$0xff]   ;;  %s1801_s25 = scalar_lea.sflag [#allocation5], %s2873_s28  ;;  %s2564_s18 = scalar_lea.vmem %s3169_s14, 1024 }
  0x7f   : > { %2137 = vmatprep.subr.bf16.mxu1 %v2649_v16  ;;  %2079 = vmatpush3.bf16.msra.mxu0 %v2324_v39  ;;  %v2338_v53 = vld [vmem:[%s3216_s2 + $0x88] sm:$0xff]   ;;  %v2341_v56 = vld [vmem:[%s3216_s2 + $0x80] sm:$0xff]   ;;  %v2343_v11 = vld [vmem:[#allocation6 + $0x18] sm:$0xff]   ;;  %p2565_p2 = scmp.ne.s32.totalorder %s3169_s14, %s2564_s18  ;;  %p3262_p12 = scmp.ne.s32.totalorder %s3254_s16, 0 }
  0x80   : > { %2080 = vmatprep.subr.bf16.mxu0 %v2325_v40  ;;  %v2339_v54 = vld [vmem:[%s3216_s2 + $0x8] sm:$0xff]   ;;  %v2342_v57 = vld [vmem:[%s3216_s2] sm:$0xff]   ;;  %v2346_v14 = vld [vmem:[#allocation6] sm:$0xff]   ;;  %s2653_s19 = smov [#allocation12]  }
  0x81   : > { %v2345_v13 = vld [vmem:[#allocation6 + $0x8] sm:$0xff]   ;;  %v2349_v15 = vld [vmem:[%s3220_s6 + $0x7c] ss:$20 sps:$4 sm:$0xff]   ;;  %p2566_p7 = pnand %p2565_p2, %p3262_p12 }
  0x82   : > { %527 = vadd.xlane.f32.xlu0 %v526_v12  ;;  %2138 = vmatpush3.bf16.msra.mxu1 %v2326_v41  ;;  %v2344_v12 = vld [vmem:[#allocation6 + $0x10] sm:$0xff]   ;;  %v2354_v18 = vld [vmem:[%s3220_s6 + $0x60] ss:$20 sps:$4 sm:$0xff]  }
  0x83   : > { %2081 = vmatpush3.bf16.msra.mxu0 %v2327_v42  ;;  %2139 = vmatprep.subr.bf16.mxu1 %v2649_v16  ;;  %v2350_v17 = vld [vmem:[%s3220_s6 + $0x88] ss:$20 sps:$4 sm:$0xff]   ;;  %p2567_p9 = pneg %p2566_p7 }
  0x84   : > { %2082 = vmatprep.subr.bf16.mxu0 %v2328_v43 }
  0x86   : > { %2140 = vmatpush3.bf16.msra.mxu1 %v2329_v44  ;;  %v2347_v44 = vld [vmem:[%s3220_s6 + $0x78] ss:$20 sps:$4 sm:$0xff]  }
  0x87   : > { %2083 = vmatpush3.bf16.msra.mxu0 %v2330_v45  ;;  %2141 = vmatprep.subr.bf16.mxu1 %v2649_v16 }
  0x88   : > { %2084 = vmatprep.subr.bf16.mxu0 %v2331_v46  ;;  %v2353_v46 = vld [vmem:[%s3220_s6 + $0x54] ss:$20 sps:$4 sm:$0xff]  }
  0x8a   : > { %2142 = vmatpush3.bf16.msra.mxu1 %v2332_v47  ;;  %v2351_v47 = vld [vmem:[%s3220_s6 + $0x50] ss:$20 sps:$4 sm:$0xff]  }
  0x8b   : > { %2085 = vmatpush3.bf16.msra.mxu0 %v2333_v48  ;;  %2143 = vmatprep.subr.bf16.mxu1 %v2649_v16  ;;  %v2357_v48 = vld [vmem:[%s3220_s6 + $0x2c] ss:$20 sps:$4 sm:$0xff]  }
  0x8c   : > { %2086 = vmatprep.subr.bf16.mxu0 %v2334_v49  ;;  %v2355_v49 = vld [vmem:[%s3220_s6 + $0x28] ss:$20 sps:$4 sm:$0xff]  }
  0x8e   : > { %2144 = vmatpush3.bf16.msra.mxu1 %v2335_v50  ;;  %v2358_v50 = vld [vmem:[%s3220_s6 + $0x38] ss:$20 sps:$4 sm:$0xff]  }
  0x8f   : > { %2087 = vmatpush3.bf16.msra.mxu0 %v2336_v51  ;;  %2145 = vmatprep.subr.bf16.mxu1 %v2649_v16  ;;  %v2361_v51 = vld [vmem:[%s3220_s6 + $0x4] ss:$20 sps:$4 sm:$0xff]  }
  0x90   : > { %2088 = vmatprep.subr.bf16.mxu0 %v2337_v52  ;;  %v2359_v52 = vld [vmem:[%s3220_s6] ss:$20 sps:$4 sm:$0xff]  }
  0x92   : > { %2146 = vmatpush3.bf16.msra.mxu1 %v2338_v53  ;;  %v2362_v53 = vld [vmem:[%s3220_s6 + $0x10] ss:$20 sps:$4 sm:$0xff]  }
  0x93   : > { %2089 = vmatpush3.bf16.msra.mxu0 %v2339_v54  ;;  %2147 = vmatprep.subr.bf16.mxu1 %v2649_v16  ;;  %v2365_v54 = vld [vmem:[%s3220_s6 + $0x84] ss:$20 sps:$4 sm:$0xff]  }
  0x94   : > { %2090 = vmatprep.subr.bf16.mxu0 %v2340_v55  ;;  %v2651_v55 = vmov 0  }
  0x96   : > { %2148 = vmatpush3.bf16.msra.mxu1 %v2341_v56 }
  0x97   : > { %2091 = vmatpush3.bf16.msra.mxu0 %v2342_v57  ;;  %2165 = vmatprep.subr.bf16.mxu1 %v2649_v16 }
  0x98   : > { %2153 = vmatprep.subr.bf16.mxu0 %v2649_v16 }
 0x107   : > { %v524_v19 = vpop.xlane.xlu0 %523 }
 0x108   : > { %v530_v20 = vmul.f32 0.0026041667, %v524_v19 }
 0x10a   : > { %v2907_v21 = vsub.f32 %v515_v3, %v530_v20  ;;  %v2909_v22 = vsub.f32 %v516_v4, %v530_v20  ;;  %v2911_v23 = vsub.f32 %v517_v5, %v530_v20 }
 0x10b   : > { %v528_v24 = vpop.xlane.xlu0 %527 }
 0x10c   : > { %v531_v25 = vmul.f32 0.0026041667, %v528_v24  ;;  %v538_v26 = vmul.f32 %v2907_v21, %v2907_v21  ;;  %v539_v27 = vmul.f32 %v2909_v22, %v2909_v22  ;;  %v540_v28 = vmul.f32 %v2911_v23, %v2911_v23 }
 0x10e   : > { %v2919_v29 = vsub.f32 %v518_v6, %v531_v25  ;;  %v2921_v30 = vsub.f32 %v519_v7, %v531_v25  ;;  %v2923_v31 = vsub.f32 %v520_v9, %v531_v25  ;;  %v544_v32 = vadd.f32 %v539_v27, %v538_v26 }
 0x110   : > { %v545_v33 = vadd.f32 %v544_v32, %v540_v28  ;;  %v541_v34 = vmul.f32 %v2919_v29, %v2919_v29  ;;  %v542_v35 = vmul.f32 %v2921_v30, %v2921_v30  ;;  %v543_v36 = vmul.f32 %v2923_v31, %v2923_v31 }
 0x112   : > { %546 = vadd.xlane.f32.xlu1 %v545_v33  ;;  %v548_v37 = vadd.f32 %v542_v35, %v541_v34 }
 0x114   : > { %v549_v38 = vadd.f32 %v548_v37, %v543_v36 }
 0x116   : > { %550 = vadd.xlane.f32.xlu1 %v549_v38 }
 0x19b   : > { %v547_v58 = vpop.xlane.xlu1 %546 }
 0x19c   : > { %v552_v59 = vmul.f32 0.0026041667, %v547_v58 }
 0x19e   : > { %v554_v60 = vadd.f32 1e-05, %v552_v59 }
 0x19f   : > { %v551_v61 = vpop.xlane.xlu1 %550 }
 0x1a0   : > { %v553_v62 = vmul.f32 0.0026041667, %v551_v61  ;;  %2408 = vrsqrt.f32 %v554_v60 }
 0x1a2   : > { %v555_v63 = vadd.f32 1e-05, %v553_v62  ;;  %v2363_v62 = vld [vmem:[%s3220_s6 + $0x80] ss:$20 sps:$4 sm:$0xff]  }
 0x1a4   : > { %2410 = vrsqrt.f32 %v555_v63 }
 0x1ad   : > { %v2409_v0 = vpop.eup %2408 }
 0x1ae   : > { %v559_v2 = vmul.f32 %v2409_v0, %v2909_v22  ;;  %v560_v3 = vmul.f32 %v2409_v0, %v2911_v23  ;;  %v558_v6 = vmul.f32 %v2409_v0, %v2907_v21  ;;  %v1953_v22 = vld [vmem:[%s3217_s3] ss:$0 sm:$0xff]  ;;  %v2368_v0 = vld [vmem:[%s3220_s6 + $0x5c] ss:$20 sps:$4 sm:$0xff]  }
 0x1b1   : > { %v2411_v1 = vpop.eup %2410 }
 0x1b2   : > { %v562_v4 = vmul.f32 %v2411_v1, %v2921_v30  ;;  %v563_v5 = vmul.f32 %v2411_v1, %v2923_v31  ;;  %v561_v7 = vmul.f32 %v2411_v1, %v2919_v29  ;;  %v2366_v1 = vld [vmem:[%s3220_s6 + $0x58] ss:$20 sps:$4 sm:$0xff]  }
 0x1b4   : > { %v565_v8 = vpack.c.bf16 %v562_v4, %v559_v2  ;;  %v566_v9 = vpack.c.bf16 %v563_v5, %v560_v3  ;;  %v564_v10 = vpack.c.bf16 %v561_v7, %v558_v6  ;;  %v2371_v2 = vld [vmem:[%s3220_s6 + $0x34] ss:$20 sps:$4 sm:$0xff]   ;;  %v2369_v3 = vld [vmem:[%s3220_s6 + $0x30] ss:$20 sps:$4 sm:$0xff]   ;;  %v2374_v4 = vld [vmem:[%s3220_s6 + $0xc] ss:$20 sps:$4 sm:$0xff]  }
 0x1b5   : > { %v2372_v5 = vld [vmem:[%s3220_s6 + $0x8] ss:$20 sps:$4 sm:$0xff]  }
 0x1b6   : > { %798 = vmatprep.mubr.bf16.mxu0 %v565_v8  ;;  %2150 = vmatmul.mubr.bf16.vlgmr.msra.gmra.mxu1 %v566_v9 }
 0x1b7   : > { %799 = vmatmul.mubr.bf16.vlgmr.msra.gmra.mxu0 %v564_v10  ;;  %2173 = vmatprep.mubr.msk.bf16.mxu1 %vm2650_vm0, %v2649_v16 }
 0x1b8   : > { %2161 = vmatprep.mubr.msk.bf16.mxu0 %vm2650_vm0, %v2649_v16  ;;  %2154 = vmatpush3.bf16.msra.mxu0 %v2343_v11 }
 0x1b9   : > { %2155 = vmatprep.subr.bf16.mxu0 %v2649_v16  ;;  %2166 = vmatpush3.bf16.msra.mxu1 %v2350_v17 }
 0x1ba   : > { %2167 = vmatprep.subr.bf16.mxu1 %v2649_v16 }
 0x1bc   : > { %2156 = vmatpush3.bf16.msra.mxu0 %v2344_v12 }
 0x1bd   : > { %2157 = vmatprep.subr.bf16.mxu0 %v2649_v16  ;;  %2168 = vmatpush3.bf16.msra.mxu1 %v2354_v18 }
 0x1be   : > { %2169 = vmatprep.subr.bf16.mxu1 %v2649_v16 }
 0x1c0   : > { %2158 = vmatpush3.bf16.msra.mxu0 %v2345_v13 }
 0x1c1   : > { %2159 = vmatprep.subr.bf16.mxu0 %v2649_v16  ;;  %2170 = vmatpush3.bf16.msra.mxu1 %v2358_v50 }
 0x1c2   : > { %2171 = vmatprep.subr.bf16.mxu1 %v2649_v16  ;;  %v1978_v16 = vld [vmem:[%s3219_s5] ss:$0 sm:$0xff] }
 0x1c4   : > { %2160 = vmatpush3.bf16.msra.mxu0 %v2346_v14 }
 0x1c5   : > { %1083 = vmatprep.subr.bf16.mxu0 %v2349_v15  ;;  %2172 = vmatpush3.bf16.msra.mxu1 %v2362_v53 }
 0x1c6   : > { %1551 = vmatprep.subr.bf16.mxu1 %v2651_v55 }
 0x276   : > { %v841_v19 = vpop.f32.mrf.mxu1 }
 0x277   : > { %v2092_v20 = vpop.f32.mrf.mxu0 }
 0x278   : > { %v2151_v21 = vpop.f32.mrf.mxu1 }
 0x279   : > { %v2093_v23 = vpop.f32.mrf.mxu0 }
 0x27a   : > { %v2094_v24 = vadd.f32 %v2093_v23, %v2092_v20  ;;  %v844_v25 = vpop.f32.mrf.mxu1 }
 0x27b   : > { %v2095_v26 = vpop.f32.mrf.mxu0 }
 0x27c   : > { %v801_v27 = vadd.f32 %v2094_v24, %v1953_v22  ;;  %v2152_v28 = vpop.f32.mrf.mxu1 }
 0x27d   : > { %v2096_v29 = vpop.f32.mrf.mxu0 }
 0x27e   : > { %v842_v30 = vadd.f32 %v841_v19, %v801_v27  ;;  %v2097_v31 = vadd.f32 %v2096_v29, %v2095_v26  ;;  %v2380_v29 = vld [vmem:[#allocation8 + $0x18] sm:$0xff]  }
 0x280   : > { %v850_v32 = vmul.f32 0.70710677, %v842_v30  ;;  %v804_v33 = vadd.f32 %v2097_v31, %v1953_v22  ;;  %v848_v39 = vmul.f32 0.5, %v842_v30  ;;  %v2382_v30 = vld [vmem:[#allocation8 + $0x10] sm:$0xff]   ;;  %v2384_v31 = vld [vmem:[#allocation8 + $0x8] sm:$0xff]  }
 0x282   : > { %2412 = verf.f32 %v850_v32  ;;  %v845_v34 = vadd.f32 %v844_v25, %v804_v33  ;;  %v2386_v32 = vld [vmem:[#allocation8] sm:$0xff]   ;;  %v2387_v33 = vld [vmem:[%s509_s30] sm:$0xff]  }
 0x284   : > { %v851_v35 = vmul.f32 0.70710677, %v845_v34  ;;  %v849_v40 = vmul.f32 0.5, %v845_v34  ;;  %v2389_v34 = vld [vmem:[%s509_s30 + $0x8] sm:$0xff]  }
 0x286   : > { %2414 = verf.f32 %v851_v35  ;;  %v2390_v35 = vld [vmem:[%s3221_s7 + $0x4] ss:$8 sps:$4 sm:$0xff]  }
 0x28f   : > { %v2413_v36 = vpop.eup %2412 }
 0x290   : > { %v854_v37 = vadd.f32 1.0, %v2413_v36  ;;  %v2396_v36 = vld [vmem:[%s509_s30 + $0x10] sm:$0xff]  }
 0x292   : > { %v856_v42 = vmul.f32 %v854_v37, %v848_v39  ;;  %v2397_v37 = vld [vmem:[%s509_s30 + $0x18] sm:$0xff]   ;;  %s2568_s30 = sshll.u32 %s2653_s19, 4  ;;  %s2569_s30 = int_to_ptr.vmem [resolvable:$false] %s2568_s30 }
 0x293   : > { %v2415_v38 = vpop.eup %2414  ;;  %s2570_s4 = scalar_lea.vmem %s2569_s30, 2048  ;;  %p2571_p0 = scmp.lt.s32.totalorder %s3169_s14, %s2569_s30 }
 0x294   : > { %v855_v41 = vadd.f32 1.0, %v2415_v38  ;;  %p2572_p10 = scmp.lt.s32.totalorder %s2570_s4, %s2564_s18 }
 0x296   : > { %v857_v43 = vmul.f32 %v855_v41, %v849_v40  ;;  %p2573_p3 = por %p2572_p10, %p2571_p0 }
 0x298   : > { %v858_v45 = vpack.c.bf16 %v857_v43, %v856_v42  ;;  %p2574_p5 = pnand %p2573_p3, %p2567_p9 }
 0x29a   : > { %2162 = vmatmul.mubr.msk.bf16.vlgmr.msra.gmra.mxu0 %vm898_vm1, %v858_v45 }
 0x29b   : > { %1084 = vmatpush1.bf16.msra.mxu0 %v2347_v44  ;;  %1107 = vmatprep.mubr.bf16.mxu0 %v2651_v55 }
 0x29c   : > { %1085 = vmatprep.subr.bf16.mxu0 %v2353_v46 }
 0x29f   : > { %1086 = vmatpush1.bf16.msra.mxu0 %v2351_v47 }
 0x2a0   : > { %1087 = vmatprep.subr.bf16.mxu0 %v2357_v48 }
 0x2a3   : > { %1088 = vmatpush1.bf16.msra.mxu0 %v2355_v49 }
 0x2a4   : > { %1089 = vmatprep.subr.bf16.mxu0 %v2361_v51 }
 0x2a7   : > { %1090 = vmatpush1.bf16.msra.mxu0 %v2359_v52 }
 0x2a8   : > { %1126 = vmatprep.subr.bf16.mxu0 %v2365_v54 }
 0x35a   : > { %v936_v56 = vpop.f32.mrf.mxu0 }
 0x35b   : > { %v937_v59 = vadd.f32 %v1978_v16, %v936_v56  ;;  %v2392_v56 = vld [vmem:[%s3221_s7] ss:$8 sps:$4 sm:$0xff]  }
 0x35c   : > { %v2163_v57 = vpop.f32.mrf.mxu0 }
 0x35d   : > { %v2395_v57 = vld [vmem:[%s3221_s7 + $0x10] ss:$8 sps:$4 sm:$0xff]  }
 0x35e   : > { %v939_v58 = vpop.f32.mrf.mxu0 }
 0x35f   : > { %v940_v60 = vadd.f32 %v1978_v16, %v939_v58  ;;  %v2393_v16 = vld [vmem:[%s3221_s7 + $0x14] ss:$8 sps:$4 sm:$0xff]   ;;  %v2400_v58 = vld [vmem:[%s3221_s7 + $0x20] ss:$8 sps:$4 sm:$0xff]  }
 0x360   : > { %v2164_v61 = vpop.f32.mrf.mxu0 }
 0x361   : > { %v943_v63 = vpack.c.bf16 %v940_v60, %v937_v59  ;;  %v2401_v59 = vld [vmem:[%s3221_s7 + $0x34] ss:$8 sps:$4 sm:$0xff]   ;;  %v2403_v60 = vld [vmem:[%s3221_s7 + $0x30] ss:$8 sps:$4 sm:$0xff]  }
 0x362   : > { %v2404_v61 = vld [vmem:[#allocation11 + $0x18] sm:$0xff]  }
 0x363   : > { %2004 = vmatmul.mubr.msk.bf16.vlgmr.msra.gmra.mxu0 %vm898_vm1, %v943_v63  ;;  %2174 = vmatmul.mubr.msk.bf16.vlgmr.msra.gmra.mxu1 %vm898_vm1, %v943_v63 }
 0x364   : > { %1127 = vmatpush1.bf16.msra.mxu0 %v2363_v62  ;;  %1150 = vmatprep.mubr.bf16.mxu0 %v2651_v55  ;;  %v2405_v62 = vld [vmem:[#allocation11 + $0x10] sm:$0xff]  }
 0x365   : > { %1128 = vmatprep.subr.bf16.mxu0 %v2368_v0  ;;  %2046 = vmatprep.mubr.msk.bf16.mxu1 %vm1538_vm3, %v2390_v35  ;;  %v2407_v0 = vld [vmem:[#allocation11] sm:$0xff]  }
 0x368   : > { %1129 = vmatpush1.bf16.msra.mxu0 %v2366_v1 }
 0x369   : > { %1130 = vmatprep.subr.bf16.mxu0 %v2371_v2 }
 0x36c   : > { %1131 = vmatpush1.bf16.msra.mxu0 %v2369_v3 }
 0x36d   : > { %1132 = vmatprep.subr.bf16.mxu0 %v2374_v4 }
 0x370   : > { %1133 = vmatpush1.bf16.msra.mxu0 %v2372_v5  ;;  %v1616_v5 = vld [vmem:[#allocation9] sm:$0xff] }
 0x371   : > { %2177 = vmatprep.subr.bf16.mxu0 %v2380_v29 }
 0x373   : > { %2005 = vmatmul.mubr.msk.bf16.vlgmr.msra.gmra.mxu0 %vm898_vm1, %v943_v63  ;;  %v2406_v63 = vld [vmem:[#allocation11 + $0x8] sm:$0xff]  }
 0x374   : > { %2178 = vmatpush3.bf16.msra.mxu0 %v2380_v29  ;;  %2185 = vmatprep.mubr.msk.bf16.mxu0 %vm898_vm1, %v2387_v33  ;;  %v1620_v33 = vld [vmem:[#allocation9 + $0x20] sm:$0xff] }
 0x375   : > { %2179 = vmatprep.subr.bf16.mxu0 %v2382_v30 }
 0x378   : > { %2180 = vmatpush3.bf16.msra.mxu0 %v2382_v30 }
 0x379   : > { %2181 = vmatprep.subr.bf16.mxu0 %v2384_v31 }
 0x37c   : > { %2182 = vmatpush3.bf16.msra.mxu0 %v2384_v31 }
 0x37d   : > { %2183 = vmatprep.subr.bf16.mxu0 %v2386_v32 }
 0x380   : > { %2184 = vmatpush3.bf16.msra.mxu0 %v2386_v32 }
 0x381   : > { %2193 = vmatprep.subr.bf16.mxu0 %v2404_v61 }
 0x383   : > { %2186 = vmatmul.mubr.msk.bf16.vlgmr.msra.gmra.mxu0 %vm898_vm1, %v2389_v34 }
 0x384   : > { %2189 = vmatprep.mubr.msk.bf16.mxu0 %vm898_vm1, %v2396_v36  ;;  %2194 = vmatpush3.bf16.msra.mxu0 %v2404_v61 }
 0x385   : > { %2195 = vmatprep.subr.bf16.mxu0 %v2405_v62 }
 0x388   : > { %2196 = vmatpush3.bf16.msra.mxu0 %v2405_v62 }
 0x389   : > { %2197 = vmatprep.subr.bf16.mxu0 %v2406_v63 }
 0x38b   : > { %2190 = vmatmul.mubr.msk.bf16.gmra.mxu0 %vm898_vm1, %v2397_v37 }
 0x38c   : > { %2198 = vmatpush3.bf16.msra.mxu0 %v2406_v63 }
 0x38d   : > { %2199 = vmatprep.subr.bf16.mxu0 %v2407_v0 }
 0x390   : > { %2200 = vmatpush3.bf16.msra.mxu0 %v2407_v0 }
 0x423   : > { %v1109_v6 = vpop.f32.mrf.mxu0  ;;  %v1195_v7 = vpop.f32.mrf.mxu1 }
 0x424   : > { %v2065_v8 = vpack.c.bf16 %v1109_v6, %v1109_v6  ;;  %v2073_v9 = vpack.c.bf16 %v1195_v7, %v1195_v7 }
 0x425   : > { %v1111_v10 = vpop.f32.mrf.mxu0  ;;  %v2175_v11 = vpop.f32.mrf.mxu1 }
 0x426   : > { %1215 = vst.msk [vmem:[#allocation2] sm:$0xf] %vm1214_vm2, %v2065_v8  ;;  %1283 = vst.msk [vmem:[#allocation2 + $0x40] sm:$0xf] %vm1214_vm2, %v2073_v9  ;;  %v2067_v12 = vpack.c.bf16 %v1111_v10, %v1111_v10  ;;  %v1617_v11 = vld [vmem:[#allocation9 + $0x8] sm:$0xff] }
 0x427   : > { %v1113_v13 = vpop.f32.mrf.mxu0  ;;  %v1198_v14 = vpop.f32.mrf.mxu1 }
 0x428   : > { %1232 = vst.msk [vmem:[#allocation2 + $0x10] sm:$0xf] %vm1214_vm2, %v2067_v12  ;;  %v2066_v15 = vpack.c.bf16 %v1113_v13, %v1113_v13  ;;  %v2074_v17 = vpack.c.bf16 %v1198_v14, %v1198_v14 }
 0x429   : > { %v1115_v18 = vpop.f32.mrf.mxu0  ;;  %v2176_v19 = vpop.f32.mrf.mxu1 }
 0x42a   : > { %1216 = vst.msk [vmem:[#allocation2 + $0x4] sm:$0xf] %vm1214_vm2, %v2066_v15  ;;  %1284 = vst.msk [vmem:[#allocation2 + $0x44] sm:$0xf] %vm1214_vm2, %v2074_v17  ;;  %v2068_v20 = vpack.c.bf16 %v1115_v18, %v1115_v18  ;;  %v1618_v19 = vld [vmem:[#allocation9 + $0x10] sm:$0xff] }
 0x42c   : > { %1233 = vst.msk [vmem:[#allocation2 + $0x14] sm:$0xf] %vm1214_vm2, %v2068_v20 }
 0x431   : > { %v2385_v53 = vld [vmem:[#allocation2] sm:$0xff]  }
 0x432   : > { %v2388_v54 = vld [vmem:[#allocation2 + $0x40] sm:$0xff]  }
 0x433   : > { %v1152_v21 = vpop.f32.mrf.mxu0  ;;  %v2381_v51 = vld [vmem:[#allocation2 + $0x10] sm:$0xff]  }
 0x434   : > { %v2069_v22 = vpack.c.bf16 %v1152_v21, %v1152_v21 }
 0x435   : > { %v1154_v23 = vpop.f32.mrf.mxu0 }
 0x436   : > { %1249 = vst.msk [vmem:[#allocation2 + $0x20] sm:$0xf] %vm1214_vm2, %v2069_v22  ;;  %v2071_v24 = vpack.c.bf16 %v1154_v23, %v1154_v23 }
 0x437   : > { %v1156_v25 = vpop.f32.mrf.mxu0 }
 0x438   : > { %1266 = vst.msk [vmem:[#allocation2 + $0x30] sm:$0xf] %vm1214_vm2, %v2071_v24  ;;  %v2070_v26 = vpack.c.bf16 %v1156_v25, %v1156_v25  ;;  %1268 = vrot.lane.b32.xlu0 %v2071_v24, %s2652_s9 }
 0x439   : > { %v1158_v27 = vpop.f32.mrf.mxu0 }
 0x43a   : > { %1250 = vst.msk [vmem:[#allocation2 + $0x24] sm:$0xf] %vm1214_vm2, %v2070_v26  ;;  %v2072_v28 = vpack.c.bf16 %v1158_v27, %v1158_v27 }
 0x43c   : > { %1267 = vst.msk [vmem:[#allocation2 + $0x34] sm:$0xf] %vm1214_vm2, %v2072_v28  ;;  %1234 = vrot.lane.b32.xlu0 %v2067_v12, %s2652_s9  ;;  %1270 = vrot.lane.b32.xlu1 %v2072_v28, %s2652_s9 }
 0x440   : > { %1217 = vrot.lane.b32.xlu0 %v2065_v8, %s2652_s9  ;;  %1251 = vrot.lane.b32.xlu1 %v2069_v22, %s2652_s9 }
 0x441   : > { %v2378_v49 = vld [vmem:[#allocation2 + $0x20] sm:$0xff]  }
 0x443   : > { %v2376_v46 = vld [vmem:[#allocation2 + $0x30] sm:$0xff]   ;;  %v2187_v1 = vpop.f32.mrf.mxu0 }
 0x444   : > { %1253 = vrot.lane.b32.xlu1 %v2070_v26, %s2652_s9  ;;  %v1619_v26 = vld [vmem:[#allocation9 + $0x18] sm:$0xff] }
 0x445   : > { %v1417_v2 = vpop.f32.mrf.mxu0 }
 0x447   : > { %v2188_v3 = vpop.f32.mrf.mxu0 }
 0x448   : > { %1236 = vrot.lane.b32.xlu1 %v2068_v20, %s2652_s9 }
 0x449   : > { %v1420_v8 = vpop.f32.mrf.mxu0 }
 0x44c   : > { %1219 = vrot.lane.b32.xlu1 %v2066_v15, %s2652_s9  ;;  %v2191_v15 = vpop.f32.mrf.mxu0 }
 0x44e   : > { %v1433_v23 = vpop.f32.mrf.mxu0 }
 0x450   : > { %v2192_v30 = vpop.f32.mrf.mxu0 }
 0x452   : > { %v1436_v37 = vpop.f32.mrf.mxu0 }
 0x4aa   : > { %v1269_v38 = vpop.permute.xlu0 %1268 }
 0x4ab   : > { %1274 = vst.msk [vmem:[#allocation2 + $0x38] sm:$0xf] %vm1214_vm2, %v1269_v38 }
 0x4ae   : > { %v1235_v39 = vpop.permute.xlu0 %1234  ;;  %v1271_v40 = vpop.permute.xlu1 %1270 }
 0x4af   : > { %1240 = vst.msk [vmem:[#allocation2 + $0x18] sm:$0xf] %vm1214_vm2, %v1235_v39  ;;  %1275 = vst.msk [vmem:[#allocation2 + $0x3c] sm:$0xf] %vm1214_vm2, %v1271_v40  ;;  %v1621_v40 = vld [vmem:[#allocation9 + $0x28] sm:$0xff] }
 0x4b2   : > { %v1218_v41 = vpop.permute.xlu0 %1217  ;;  %v1252_v42 = vpop.permute.xlu1 %1251 }
 0x4b3   : > { %1223 = vst.msk [vmem:[#allocation2 + $0x8] sm:$0xf] %vm1214_vm2, %v1218_v41  ;;  %1257 = vst.msk [vmem:[#allocation2 + $0x28] sm:$0xf] %vm1214_vm2, %v1252_v42 }
 0x4b6   : > { %v1254_v43 = vpop.permute.xlu1 %1253  ;;  %v2375_v44 = vld [vmem:[#allocation2 + $0x38] sm:$0xff]  }
 0x4b7   : > { %1258 = vst.msk [vmem:[#allocation2 + $0x2c] sm:$0xf] %vm1214_vm2, %v1254_v43  ;;  %1552 = vmatpush1.bf16.msra.mxu1 %v2375_v44 }
 0x4b8   : > { %1553 = vmatprep.subr.bf16.mxu1 %v2651_v55 }
 0x4ba   : > { %v1237_v45 = vpop.permute.xlu1 %1236 }
 0x4bb   : > { %1241 = vst.msk [vmem:[#allocation2 + $0x1c] sm:$0xf] %vm1214_vm2, %v1237_v45  ;;  %1554 = vmatpush1.bf16.msra.mxu1 %v2376_v46 }
 0x4bc   : > { %1555 = vmatprep.subr.bf16.mxu1 %v2651_v55 }
 0x4be   : > { %v1220_v47 = vpop.permute.xlu1 %1219  ;;  %v2377_v48 = vld [vmem:[#allocation2 + $0x28] sm:$0xff]  }
 0x4bf   : > { %1224 = vst.msk [vmem:[#allocation2 + $0xc] sm:$0xf] %vm1214_vm2, %v1220_v47  ;;  %1556 = vmatpush1.bf16.msra.mxu1 %v2377_v48 }
 0x4c0   : > { %1557 = vmatprep.subr.bf16.mxu1 %v2651_v55 }
 0x4c2   : > { %v2379_v50 = vld [vmem:[#allocation2 + $0x18] sm:$0xff]  }
 0x4c3   : > { %1558 = vmatpush1.bf16.msra.mxu1 %v2378_v49  ;;  %v1622_v49 = vld [vmem:[#allocation9 + $0x30] sm:$0xff] }
 0x4c4   : > { %1559 = vmatprep.subr.bf16.mxu1 %v2651_v55 }
 0x4c6   : > { %v2383_v52 = vld [vmem:[#allocation2 + $0x8] sm:$0xff]  }
 0x4c7   : > { %1560 = vmatpush1.bf16.msra.mxu1 %v2379_v50 }
 0x4c8   : > { %1561 = vmatprep.subr.bf16.mxu1 %v2651_v55 }
 0x4cb   : > { %1562 = vmatpush1.bf16.msra.mxu1 %v2381_v51 }
 0x4cc   : > { %1563 = vmatprep.subr.bf16.mxu1 %v2651_v55 }
 0x4cf   : > { %1564 = vmatpush1.bf16.msra.mxu1 %v2383_v52 }
 0x4d0   : > { %1565 = vmatprep.subr.bf16.mxu1 %v2651_v55 }
 0x4d3   : > { %1566 = vmatpush1.bf16.msra.mxu1 %v2385_v53 }
 0x4d4   : > { %1581 = vmatprep.subr.bf16.mxu1 %v2651_v55  ;;  %v2398_v55 = vld [vmem:[%s3221_s7 + $0x24] ss:$8 sps:$4 sm:$0xff]  }
 0x4d7   : > { %1582 = vmatpush2.bf16.msra.mxu1 %v2388_v54 }
 0x4d8   : > { %2209 = vmatprep.subr.bf16.mxu1 %v2404_v61 }
 0x4da   : > { %1584 = vmatmul.mubr.bf16.vlgmr.msra.gmra.mxu1 %v2392_v56 }
 0x4db   : > { %2047 = vmatprep.mubr.msk.bf16.mxu1 %vm1538_vm3, %v2393_v16  ;;  %2213 = vmatpush3.bf16.msra.mxu1 %v2404_v61 }
 0x4dc   : > { %2210 = vmatprep.subr.bf16.mxu1 %v2405_v62 }
 0x4df   : > { %2214 = vmatpush3.bf16.msra.mxu1 %v2405_v62 }
 0x4e0   : > { %2211 = vmatprep.subr.bf16.mxu1 %v2406_v63 }
 0x4e2   : > { %1592 = vmatmul.mubr.bf16.gmra.mxu1 %v2395_v57 }
 0x4e3   : > { %2048 = vmatprep.mubr.msk.bf16.mxu1 %vm1538_vm3, %v2398_v55  ;;  %2215 = vmatpush3.bf16.msra.mxu1 %v2406_v63 }
 0x4e4   : > { %2212 = vmatprep.subr.bf16.mxu1 %v2407_v0 }
 0x4e7   : > { %2216 = vmatpush3.bf16.msra.mxu1 %v2407_v0 }
 0x4ea   : > { %1600 = vmatmul.mubr.bf16.gmra.mxu1 %v2400_v58 }
 0x4eb   : > { %2049 = vmatprep.mubr.msk.bf16.mxu1 %vm1538_vm3, %v2401_v59 }
 0x4f2   : > { %1608 = vmatmul.mubr.bf16.gmra.mxu1 %v2403_v60  ;;  %v1623_v60 = vld [vmem:[#allocation9 + $0x38] sm:$0xff] }
 0x59a   : > { %v1585_v4 = vpop.f32.mrf.mxu1 }
 0x59b   : > { %v1586_v6 = vadd.f32 %v1585_v4, %v1417_v2 }
 0x59c   : > { %v1587_v7 = vpop.f32.mrf.mxu1 }
 0x59d   : > { %v1624_v9 = vadd.f32 %v1616_v5, %v1586_v6 }
 0x59e   : > { %v1588_v10 = vpop.f32.mrf.mxu1 }
 0x59f   : > { %v1640_v12 = vmul.f32 0.70710677, %v1624_v9  ;;  %v1589_v13 = vadd.f32 %v1588_v10, %v1420_v8  ;;  %v1632_v54 = vmul.f32 0.5, %v1624_v9 }
 0x5a0   : > { %v1590_v14 = vpop.f32.mrf.mxu1 }
 0x5a1   : > { %v1625_v17 = vadd.f32 %v1617_v11, %v1589_v13  ;;  %2416 = verf.f32 %v1640_v12 }
 0x5a2   : > { %v1593_v18 = vpop.f32.mrf.mxu1 }
 0x5a3   : > { %v1641_v20 = vmul.f32 0.70710677, %v1625_v17  ;;  %v1594_v21 = vadd.f32 %v2187_v1, %v1593_v18  ;;  %v1633_v50 = vmul.f32 0.5, %v1625_v17 }
 0x5a4   : > { %v1595_v22 = vpop.f32.mrf.mxu1 }
 0x5a5   : > { %2418 = verf.f32 %v1641_v20  ;;  %v1626_v24 = vadd.f32 %v1618_v19, %v1594_v21 }
 0x5a6   : > { %v1596_v25 = vpop.f32.mrf.mxu1 }
 0x5a7   : > { %v1642_v27 = vmul.f32 0.70710677, %v1626_v24  ;;  %v1597_v28 = vadd.f32 %v2188_v3, %v1596_v25  ;;  %v1634_v4 = vmul.f32 0.5, %v1626_v24 }
 0x5a8   : > { %v1598_v29 = vpop.f32.mrf.mxu1 }
 0x5a9   : > { %2420 = verf.f32 %v1642_v27  ;;  %v1627_v31 = vadd.f32 %v1619_v26, %v1597_v28 }
 0x5aa   : > { %v1601_v32 = vpop.f32.mrf.mxu1 }
 0x5ab   : > { %v1643_v34 = vmul.f32 0.70710677, %v1627_v31  ;;  %v1602_v35 = vadd.f32 %v1601_v32, %v1433_v23  ;;  %v1635_v5 = vmul.f32 0.5, %v1627_v31 }
 0x5ac   : > { %v1603_v36 = vpop.f32.mrf.mxu1 }
 0x5ad   : > { %2422 = verf.f32 %v1643_v34  ;;  %v1628_v38 = vadd.f32 %v1620_v33, %v1602_v35 }
 0x5ae   : > { %v1604_v39 = vpop.f32.mrf.mxu1  ;;  %v2417_v41 = vpop.eup %2416 }
 0x5af   : > { %v1644_v42 = vmul.f32 0.70710677, %v1628_v38  ;;  %v1605_v43 = vadd.f32 %v1604_v39, %v1436_v37  ;;  %v1656_v47 = vadd.f32 1.0, %v2417_v41  ;;  %v1636_v14 = vmul.f32 0.5, %v1628_v38 }
 0x5b0   : > { %v1606_v44 = vpop.f32.mrf.mxu1 }
 0x5b1   : > { %2424 = verf.f32 %v1644_v42  ;;  %v1629_v45 = vadd.f32 %v1621_v40, %v1605_v43  ;;  %v1664_v58 = vmul.f32 %v1656_v47, %v1632_v54 }
 0x5b2   : > { %v2419_v46 = vpop.eup %2418  ;;  %v1609_v48 = vpop.f32.mrf.mxu1 }
 0x5b3   : > { %v1657_v51 = vadd.f32 1.0, %v2419_v46  ;;  %v1645_v52 = vmul.f32 0.70710677, %v1629_v45  ;;  %v1610_v53 = vadd.f32 %v2191_v15, %v1609_v48  ;;  %v1637_v15 = vmul.f32 0.5, %v1629_v45 }
 0x5b4   : > { %v1611_v56 = vpop.f32.mrf.mxu1 }
 0x5b5   : > { %v1665_v16 = vmul.f32 %v1657_v51, %v1633_v50  ;;  %2426 = verf.f32 %v1645_v52  ;;  %v1630_v57 = vadd.f32 %v1622_v49, %v1610_v53 }
 0x5b6   : > { %v2421_v55 = vpop.eup %2420  ;;  %v1612_v59 = vpop.f32.mrf.mxu1 }
 0x5b7   : > { %v1646_v61 = vmul.f32 0.70710677, %v1630_v57  ;;  %v1613_v62 = vadd.f32 %v2192_v30, %v1612_v59  ;;  %v1672_v0 = vpack.c.bf16 %v1665_v16, %v1664_v58  ;;  %v1658_v1 = vadd.f32 1.0, %v2421_v55  ;;  %v2050_v30 = vld [vmem:[%s3225_s11] ss:$0 sm:$0xff] }
 0x5b8   : > { %v1614_v63 = vpop.f32.mrf.mxu1  ;;  %v1638_v24 = vmul.f32 0.5, %v1630_v57 }
 0x5b9   : > { %2428 = verf.f32 %v1646_v61  ;;  %v1631_v2 = vadd.f32 %v1623_v60, %v1613_v62  ;;  %2201 = vmatprep.mubr.msk.bf16.mxu0 %vm898_vm1, %v1672_v0  ;;  %v1666_v8 = vmul.f32 %v1658_v1, %v1634_v4 }
 0x5ba   : > { %v2423_v3 = vpop.eup %2422 }
 0x5bb   : > { %v1659_v6 = vadd.f32 1.0, %v2423_v3  ;;  %v1647_v7 = vmul.f32 0.70710677, %v1631_v2  ;;  %v1639_v25 = vmul.f32 0.5, %v1631_v2 }
 0x5bd   : > { %v1667_v9 = vmul.f32 %v1659_v6, %v1635_v5  ;;  %2430 = verf.f32 %v1647_v7 }
 0x5be   : > { %v2425_v10 = vpop.eup %2424 }
 0x5bf   : > { %v1673_v11 = vpack.c.bf16 %v1667_v9, %v1666_v8  ;;  %v1660_v12 = vadd.f32 1.0, %v2425_v10 }
 0x5c1   : > { %2202 = vmatmul.mubr.msk.bf16.vlgmr.msra.gmra.mxu0 %vm898_vm1, %v1673_v11  ;;  %v1668_v18 = vmul.f32 %v1660_v12, %v1636_v14 }
 0x5c2   : > { %v2427_v13 = vpop.eup %2426 }
 0x5c3   : > { %v1661_v17 = vadd.f32 1.0, %v2427_v13 }
 0x5c5   : > { %v1669_v19 = vmul.f32 %v1661_v17, %v1637_v15 }
 0x5c6   : > { %v2429_v20 = vpop.eup %2428 }
 0x5c7   : > { %v1674_v21 = vpack.c.bf16 %v1669_v19, %v1668_v18  ;;  %v1662_v22 = vadd.f32 1.0, %v2429_v20 }
 0x5c9   : > { %2205 = vmatprep.mubr.msk.bf16.mxu1 %vm898_vm1, %v1674_v21  ;;  %v1670_v27 = vmul.f32 %v1662_v22, %v1638_v24 }
 0x5ca   : > { %v2431_v23 = vpop.eup %2430 }
 0x5cb   : > { %v1663_v26 = vadd.f32 1.0, %v2431_v23 }
 0x5cd   : > { %v1671_v28 = vmul.f32 %v1663_v26, %v1639_v25 }
 0x5cf   : > { %v1675_v29 = vpack.c.bf16 %v1671_v28, %v1670_v27 }
 0x5d1   : > { %2206 = vmatmul.mubr.msk.bf16.vlgmr.msra.gmra.mxu1 %vm898_vm1, %v1675_v29 }
 0x681   : > { %v2203_v31 = vpop.f32.mrf.mxu0 }
 0x682   : > { %v1770_v32 = vadd.f32 %v2203_v31, %v2050_v30 }
 0x683   : > { %v1761_v33 = vpop.f32.mrf.mxu0 }
 0x684   : > { %1794 = vst.msk [vmem:[%s504_s20 + $0x10] sm:$0xff] %vm898_vm1, %v1770_v32  ;;  %v1762_v34 = vadd.f32 %v2050_v30, %v1761_v33 }
 0x685   : > { %v2204_v35 = vpop.f32.mrf.mxu0 }
 0x686   : > { %1792 = vst.msk [vmem:[%s504_s20] sm:$0xff] %vm898_vm1, %v1762_v34  ;;  %v1773_v36 = vadd.f32 %v2204_v35, %v2050_v30 }
 0x687   : > { %v1764_v37 = vpop.f32.mrf.mxu0 }
 0x688   : > { %1795 = vst.msk [vmem:[%s504_s20 + $0x18] sm:$0xff] %vm898_vm1, %v1773_v36  ;;  %v1765_v38 = vadd.f32 %v2050_v30, %v1764_v37 }
 0x68a   : > { %1793 = vst.msk [vmem:[%s504_s20 + $0x8] sm:$0xff] %vm898_vm1, %v1765_v38 }
 0x691   : > { %v2207_v39 = vpop.f32.mrf.mxu1 }
 0x692   : > { %v1786_v40 = vadd.f32 %v2207_v39, %v2050_v30 }
 0x693   : > { %v1777_v41 = vpop.f32.mrf.mxu1 }
 0x694   : > { %1798 = vst.msk [vmem:[%s504_s20 + $0x30] sm:$0xff] %vm898_vm1, %v1786_v40  ;;  %v1778_v42 = vadd.f32 %v2050_v30, %v1777_v41 }
 0x695   : > { %v2208_v43 = vpop.f32.mrf.mxu1 }
 0x696   : > { %1796 = vst.msk [vmem:[%s504_s20 + $0x20] sm:$0xff] %vm898_vm1, %v1778_v42  ;;  %v1789_v44 = vadd.f32 %v2208_v43, %v2050_v30 }
 0x697   : > { %v1780_v45 = vpop.f32.mrf.mxu1 }
 0x698   : > { %1799 = vst.msk [vmem:[%s504_s20 + $0x38] sm:$0xff] %vm898_vm1, %v1789_v44  ;;  %v1781_v46 = vadd.f32 %v2050_v30, %v1780_v45 }
 0x69a   : > { %1797 = vst.msk [vmem:[%s504_s20 + $0x28] sm:$0xff] %vm898_vm1, %v1781_v46 }
 0x69b   : > { %2577 = shalt.err (!%p2574_p5)
}
 0x69c   : > { %s2578_s27 = scalar_lea.hbm %s3167_s10, 1024  ;;  %s2582_s17 = scalar_lea.hbm %s3226_s12, 2048 }
 0x69d   : > { %p2579_p4 = scmp.ne.s32.totalorder %s3167_s10, %s2578_s27  ;;  %p2583_p13 = scmp.lt.s32.totalorder %s3167_s10, %s3226_s12 }
 0x69e   : > { %p2584_p11 = scmp.lt.s32.totalorder %s2582_s17, %s2578_s27 }
 0x69f   : > { %p2580_p6 = pnand %p2579_p4, %p3262_p12 }
 0x6a0   : > { %p2585_p1 = por %p2584_p11, %p2583_p13 }
 0x6a1   : > { %p2581_p8 = pneg %p2580_p6 }
 0x6a3   : > { %p2586_p2 = pnand %p2585_p1, %p2581_p8 }
 0x6a5   : > { %2589 = shalt.err (!%p2586_p2)
}
 0x6a6   : > { %s2654_s9 = smov 128   ;;  %s2655_s8 = smov 8  }
 0x6a7   : > { %2238 = dma.vmem_to_hbm [thread:$0]  (%p3262_p12), %s3169_s14, 1024, %s3167_s10, %s1801_s25, %s2654_s9, %s2654_s9, %s2655_s8  }
 0x6a8 PF: > { %s3263_s18 = sld [smem:[#allocation17_spill]]  ;;  %p3266_p9 = scmp.ge.s32.totalorder %s2636_s24, 2 }
 0x6a9   : > { %s3264_s19 = sld [smem:[#allocation18_spill]] }
 0x6ae   : > { %s1829_s30 = sand.u32 1, %s3263_s18  }
 0x6af   : > { %p3265_p7 = scmp.ne.s32.totalorder %s3264_s19, 0  ;;  %s1830_s4 = scalar_lea.sflag [#allocation5], %s1829_s30 }
 0x6b1   : > { %p2258_p0 = pnand %p3266_p9, %p3265_p7 }
 0x6b3   : > { %p2259_p10 = pneg %p2258_p0 }
 0x6b5   : > { %2619 = dma.done.wait (%p2259_p10), %s1830_s4, 1024  }
 0x6b6   : > { %2621 = vsyncadd (%p2259_p10), %s1830_s4, 4294966272  ;;  %p27_p3 = scmp.ge.s32.totalorder %s2818_s13, 4   ;;  %s3267_s21 = smov %s2628_s22 }
 0x6b7   : > { %s3268_s22 = smov %s2632_s23  ;;  %s3269_s23 = smov %s2827_s26 }
 0x6b8   : > { %s3270_s24 = smov %s2818_s13  ;;  %29 = sbr.rel (!%p27_p3) target bundleno = 12 (0xc), region = 132 }
 0x6bd   :  { %1835 = vsyncpa [#allocation4], 1 }
 0x6be   :  { %1837 = vsyncpa [#allocation4 + $0x1], 1 }
 0x6bf   :  { %1838 = vsyncpa [#allocation7], 1 }
 0x6c0   :  { %1839 = vsyncpa [#allocation10], 1 }
 0x6c1   :  { %1840 = vsyncpa [#allocation5], 1 }
 0x6c2   :  { %1842 = vsyncpa [#allocation5 + $0x1], 1 }

</bundles_post_ra>
